<compile_context>
chip_gen: v7x
topology: tpu7x:2x2x1
jax: 0.10.0
libtpu: 0.0.40
codegen_flags: <defaults>
</compile_context>

<pallas_src>
import functools

import jax
import jax.numpy as jnp
from jax.experimental import pallas as pl
from jax.experimental.pallas import tpu as pltpu  # noqa: F401  (kept for TPU-specific tuning hooks)


# ----------------------------------------------------------------------------
# Fused Pallas kernel
# ----------------------------------------------------------------------------
def _causal_conv(x, w_cat, b, *, dilation, ksize):
    """Causal dilated Conv1d (+ Chomp1d) as a single MXU matmul.

    x     : (B, L, Cin)   activations, f32
    w_cat : (Cin, K*Cout) tap-k weight matrix occupies lanes [k*Cout,(k+1)*Cout)
    b     : (1, Cout)

    out[b, t, o] = bias[o] + sum_{k,c} w[k, c, o] * x[b, t - (K-1-k)*d, c]
    (positions before t=0 read zero), i.e. Conv1d(padding=(K-1)*d) + Chomp1d.
    """
    B, L, Cin = x.shape
    KCo = w_cat.shape[1]
    Cout = KCo // ksize
    pad = (ksize - 1) * dilation

    # Pre-pad ONCE: `pad` leading zeros (causality, per-batch so no cross-batch
    # leakage) plus trailing zeros so the padded time extent is a multiple of 8
    # (keeps the leading-dim merge reshape layout-trivial).  Trailing zeros are
    # never read by any tap.
    tail = (-(pad + L)) % 8
    pieces = [jnp.zeros((B, pad, Cin), x.dtype), x]
    if tail:
        pieces.append(jnp.zeros((B, tail, Cin), x.dtype))
    xp = jnp.concatenate(pieces, axis=1)                       # (B, P, Cin)
    P = pad + L + tail

    # One matmul computes every tap's contribution at every padded position.
    z = jnp.dot(xp.reshape(B * P, Cin), w_cat,
                preferred_element_type=jnp.float32)            # (B*P, K*Cout)
    z = z.reshape(B, P, KCo)

    # Tap k of output t reads padded position t + k*d, lanes [k*Cout,(k+1)*Cout).
    acc = z[:, 0:L, 0:Cout]
    for k in range(1, ksize):
        acc = acc + z[:, k * dilation:k * dilation + L, k * Cout:(k + 1) * Cout]
    return acc + b


def fused_tcn_kernel(*refs, block_meta, ksize):
    """Whole TCNEncoder forward, full batch, one invocation.

    refs = (x, [w1c, b1, w2c, b2, (wd, bd if downsample)] * nblocks, wp, bp, out)
    block_meta = ((dilation, has_downsample), ...)   # static
    """
    refs = list(refs)
    o_ref = refs.pop()           # single output is the last ref
    x_ref = refs.pop(0)
    x = x_ref[...]               # (B, L, C0), f32 — stays in VMEM/vregs throughout

    for dilation, has_downsample in block_meta:
        w1 = refs.pop(0); b1 = refs.pop(0)
        w2 = refs.pop(0); b2 = refs.pop(0)
        # conv1 -> chomp -> relu -> (dropout: identity)
        h = jnp.maximum(
            _causal_conv(x, w1[...], b1[...], dilation=dilation, ksize=ksize), 0.0)
        # conv2 -> chomp -> relu -> (dropout: identity)
        h = jnp.maximum(
            _causal_conv(h, w2[...], b2[...], dilation=dilation, ksize=ksize), 0.0)
        if has_downsample:
            # 1x1-conv residual, batch folded into M.
            wd = refs.pop(0); bd = refs.pop(0)
            B, L, Cin = x.shape
            Cout = wd.shape[1]
            res = jnp.dot(x.reshape(B * L, Cin), wd[...],
                          preferred_element_type=jnp.float32).reshape(B, L, Cout)
            res = res + bd[...]
        else:
            res = x              # identity residual: no matmul
        x = jnp.maximum(h + res, 0.0)

    wp = refs.pop(0); bp = refs.pop(0)
    assert not refs, "ref bookkeeping mismatch"

    # mean over time + Linear projection, fused (no extra launch / HBM read).
    feat = jnp.mean(x, axis=1)                                  # (B, C_last)
    o_ref[...] = jnp.dot(feat, wp[...],
                         preferred_element_type=jnp.float32) + bp[...]


# ----------------------------------------------------------------------------
# Wrapper
# ----------------------------------------------------------------------------
def tcn_encoder_forward(x_bcl, params, *, kernel_size):
    """x_bcl: (B, num_features, seq_len)  ->  (B, emb_dim)."""
    x = jnp.transpose(x_bcl, (0, 2, 1)).astype(jnp.float32)     # (B, L, C0)
    B = x.shape[0]
    E = params["wp"].shape[1]

    args = [x]
    block_meta = []
    for blk in params["blocks"]:
        has_ds = blk["wd"] is not None
        block_meta.append((blk["dilation"], has_ds))
        args += [blk["w1c"], blk["b1"], blk["w2c"], blk["b2"]]
        if has_ds:
            args += [blk["wd"], blk["bd"]]
    args += [params["wp"], params["bp"]]

    kernel = functools.partial(
        fused_tcn_kernel, block_meta=tuple(block_meta), ksize=kernel_size)

    # Single fused pallas_call, no grid: full arrays (a few KiB total) live in
    # VMEM; weights are DMA'd once; no intermediate activation HBM traffic.
    return pl.pallas_call(
        kernel,
        out_shape=jax.ShapeDtypeStruct((B, E), jnp.float32),
    )(*args)


# ----------------------------------------------------------------------------
# Deterministic parameter construction (synthetic weights; no checkpoint load)
# ----------------------------------------------------------------------------
def make_params(key, num_features=1, num_channels=(16, 16, 32), kernel_size=3,
                emb_dim=64):
    def tap_cat(w_t):
        # PyTorch Conv1d weight (Cout, Cin, K) -> (Cin, K*Cout):
        # lanes [k*Cout, (k+1)*Cout) hold tap k's (Cin, Cout) matrix.
        co, ci, kk = w_t.shape
        return jnp.transpose(w_t, (1, 2, 0)).reshape(ci, kk * co)

    params = {"blocks": []}
    in_ch = num_features
    for i, out_ch in enumerate(num_channels):
        dilation = 2 ** i
        key, k1, k2, k3, k4, k5, k6 = jax.random.split(key, 7)
        w1_t = 0.1 * jax.random.normal(k1, (out_ch, in_ch, kernel_size), jnp.float32)
        b1 = 0.1 * jax.random.normal(k2, (out_ch,), jnp.float32)
        w2_t = 0.1 * jax.random.normal(k3, (out_ch, out_ch, kernel_size), jnp.float32)
        b2 = 0.1 * jax.random.normal(k4, (out_ch,), jnp.float32)
        if in_ch != out_ch:
            wd_t = 0.1 * jax.random.normal(k5, (out_ch, in_ch, 1), jnp.float32)
            bd = 0.1 * jax.random.normal(k6, (out_ch,), jnp.float32)
            wd = jnp.transpose(wd_t[:, :, 0], (1, 0))            # (Cin, Cout)
            bd2 = bd.reshape(1, out_ch)
        else:
            wd_t, wd, bd2 = None, None, None                     # identity residual

        params["blocks"].append(dict(
            dilation=dilation,
            w1c=tap_cat(w1_t), b1=b1.reshape(1, out_ch),
            w2c=tap_cat(w2_t), b2=b2.reshape(1, out_ch),
            wd=wd, bd=bd2,
            # PyTorch-layout copies for the pure-JAX reference check.
            _w1_t=w1_t, _w2_t=w2_t, _wd_t=wd_t,
        ))
        in_ch = out_ch

    key, kp, kb = jax.random.split(key, 3)
    wp_t = 0.1 * jax.random.normal(kp, (emb_dim, in_ch), jnp.float32)  # Linear weight
    bp = 0.1 * jax.random.normal(kb, (emb_dim,), jnp.float32)
    params["wp"] = jnp.transpose(wp_t, (1, 0))
    params["bp"] = bp.reshape(1, emb_dim)
    params["_wp_t"] = wp_t
    return params


# ----------------------------------------------------------------------------
# Pure-JAX reference (mirrors PyTorch Conv1d + Chomp1d semantics) for validation
# ----------------------------------------------------------------------------
def _ref_conv1d(x_bcl, w_oik, b, dilation, padding):
    y = jax.lax.conv_general_dilated(
        x_bcl, w_oik, window_strides=(1,), padding=[(padding, padding)],
        rhs_dilation=(dilation,), dimension_numbers=("NCH", "OIH", "NCH"))
    y = y + b[None, :, None]
    return y[..., : y.shape[-1] - padding] if padding > 0 else y


def ref_forward(x_bcl, params, *, kernel_size):
    x = x_bcl.astype(jnp.float32)
    for blk in params["blocks"]:
        d = blk["dilation"]
        pad = (kernel_size - 1) * d
        out = jnp.maximum(_ref_conv1d(x, blk["_w1_t"], blk["b1"][0], d, pad), 0.0)
        out = jnp.maximum(_ref_conv1d(out, blk["_w2_t"], blk["b2"][0], d, pad), 0.0)
        res = x if blk["_wd_t"] is None else _ref_conv1d(
            x, blk["_wd_t"], blk["bd"][0], 1, 0)
        x = jnp.maximum(out + res, 0.0)
    feat = jnp.mean(x, axis=-1)                      # (B, C)
    return feat @ params["_wp_t"].T + params["bp"][0]


# ----------------------------------------------------------------------------
if __name__ == "__main__":
    # TODO(synk): nn.Dropout layers are treated as identity (inference mode).
    B, num_features, seq_len = 2, 1, 16
    num_channels = (16, 16, 32)
    kernel_size = 3
    emb_dim = 64

    key = jax.random.PRNGKey(0)
    key, kx = jax.random.split(key)
    x = jax.random.normal(kx, (B, num_features, seq_len), jnp.float32)

    params = make_params(key, num_features, num_channels, kernel_size, emb_dim)

    emb = tcn_encoder_forward(x, params, kernel_size=kernel_size)
    emb = jax.block_until_ready(emb)

    ref = ref_forward(x, params, kernel_size=kernel_size)
    assert emb.shape == (B, emb_dim)
    assert jnp.allclose(emb, ref, rtol=1e-4, atol=1e-4), (
        f"max abs err = {jnp.max(jnp.abs(emb - ref))}")

    print("KERNEL_OK")
</pallas_src>

<mosaic_0001>
module attributes {stable_mosaic.version = 11 : i64} {
  func.func @fused_tcn_kernel(%arg0: memref<2x16x1xf32, #tpu.memory_space<vmem>>, %arg1: memref<1x48xf32, #tpu.memory_space<vmem>>, %arg2: memref<1x16xf32, #tpu.memory_space<vmem>>, %arg3: memref<16x48xf32, #tpu.memory_space<vmem>>, %arg4: memref<1x16xf32, #tpu.memory_space<vmem>>, %arg5: memref<1x16xf32, #tpu.memory_space<vmem>>, %arg6: memref<1x16xf32, #tpu.memory_space<vmem>>, %arg7: memref<16x48xf32, #tpu.memory_space<vmem>>, %arg8: memref<1x16xf32, #tpu.memory_space<vmem>>, %arg9: memref<16x48xf32, #tpu.memory_space<vmem>>, %arg10: memref<1x16xf32, #tpu.memory_space<vmem>>, %arg11: memref<16x96xf32, #tpu.memory_space<vmem>>, %arg12: memref<1x32xf32, #tpu.memory_space<vmem>>, %arg13: memref<32x96xf32, #tpu.memory_space<vmem>>, %arg14: memref<1x32xf32, #tpu.memory_space<vmem>>, %arg15: memref<16x32xf32, #tpu.memory_space<vmem>>, %arg16: memref<1x32xf32, #tpu.memory_space<vmem>>, %arg17: memref<32x64xf32, #tpu.memory_space<vmem>>, %arg18: memref<1x64xf32, #tpu.memory_space<vmem>>, %arg19: memref<2x64xf32, #tpu.memory_space<vmem>>) attributes {dimension_semantics = [], scalar_prefetch = 0 : i64, scratch_operands = 0 : i64, tpu.core_type = #tpu.core_type<tc>} {
    %c0 = arith.constant 0 : index
    %c0_0 = arith.constant 0 : index
    %c0_1 = arith.constant 0 : index
    %0 = vector.load %arg0[%c0, %c0_0, %c0_1] : memref<2x16x1xf32, #tpu.memory_space<vmem>>, vector<2x16x1xf32>
    %c0_2 = arith.constant 0 : index
    %c0_3 = arith.constant 0 : index
    %1 = vector.load %arg1[%c0_2, %c0_3] : memref<1x48xf32, #tpu.memory_space<vmem>>, vector<1x48xf32>
    %c0_4 = arith.constant 0 : index
    %c0_5 = arith.constant 0 : index
    %2 = vector.load %arg2[%c0_4, %c0_5] : memref<1x16xf32, #tpu.memory_space<vmem>>, vector<1x16xf32>
    %cst = arith.constant 0.000000e+00 : f32
    %3 = vector.broadcast %cst : f32 to vector<2x2x1xf32>
    %cst_6 = arith.constant 0.000000e+00 : f32
    %4 = vector.broadcast %cst_6 : f32 to vector<2x6x1xf32>
    %5 = tpu.concatenate %3, %0, %4 in 1 : vector<2x2x1xf32>, vector<2x16x1xf32>, vector<2x6x1xf32> -> vector<2x24x1xf32>
    %6 = vector.shape_cast %5 : vector<2x24x1xf32> to vector<48x1xf32>
    %cst_7 = arith.constant dense<0.000000e+00> : vector<48x48xf32>
    %7 = tpu.matmul %6, %1, %cst_7 {dimension_numbers = #tpu.dot_dimension_numbers<[1], [0], [0], [1], [0, 0, 1, 1], [], []>} : vector<48x1xf32>, vector<1x48xf32>, vector<48x48xf32> -> vector<48x48xf32>
    %8 = vector.shape_cast %7 : vector<48x48xf32> to vector<2x24x48xf32>
    %9 = vector.extract_strided_slice %8 {offsets = [0, 0, 0], sizes = [2, 16, 16], strides = [1, 1, 1]} : vector<2x24x48xf32> to vector<2x16x16xf32>
    %10 = vector.extract_strided_slice %8 {offsets = [0, 1, 16], sizes = [2, 16, 16], strides = [1, 1, 1]} : vector<2x24x48xf32> to vector<2x16x16xf32>
    %11 = arith.addf %9, %10 : vector<2x16x16xf32>
    %12 = vector.extract_strided_slice %8 {offsets = [0, 2, 32], sizes = [2, 16, 16], strides = [1, 1, 1]} : vector<2x24x48xf32> to vector<2x16x16xf32>
    %13 = arith.addf %11, %12 : vector<2x16x16xf32>
    %14 = vector.shape_cast %2 : vector<1x16xf32> to vector<1x1x16xf32>
    %15 = vector.broadcast %14 : vector<1x1x16xf32> to vector<2x16x16xf32>
    %16 = arith.addf %13, %15 : vector<2x16x16xf32>
    %cst_8 = arith.constant 0.000000e+00 : f32
    %17 = vector.broadcast %cst_8 : f32 to vector<2x16x16xf32>
    %18 = arith.maximumf %16, %17 : vector<2x16x16xf32>
    %c0_9 = arith.constant 0 : index
    %c0_10 = arith.constant 0 : index
    %19 = vector.load %arg3[%c0_9, %c0_10] : memref<16x48xf32, #tpu.memory_space<vmem>>, vector<16x48xf32>
    %c0_11 = arith.constant 0 : index
    %c0_12 = arith.constant 0 : index
    %20 = vector.load %arg4[%c0_11, %c0_12] : memref<1x16xf32, #tpu.memory_space<vmem>>, vector<1x16xf32>
    %cst_13 = arith.constant 0.000000e+00 : f32
    %21 = vector.broadcast %cst_13 : f32 to vector<2x2x16xf32>
    %cst_14 = arith.constant 0.000000e+00 : f32
    %22 = vector.broadcast %cst_14 : f32 to vector<2x6x16xf32>
    %23 = tpu.concatenate %21, %18, %22 in 1 : vector<2x2x16xf32>, vector<2x16x16xf32>, vector<2x6x16xf32> -> vector<2x24x16xf32>
    %24 = vector.shape_cast %23 : vector<2x24x16xf32> to vector<48x16xf32>
    %cst_15 = arith.constant dense<0.000000e+00> : vector<48x48xf32>
    %25 = tpu.matmul %24, %19, %cst_15 {dimension_numbers = #tpu.dot_dimension_numbers<[1], [0], [0], [1], [0, 0, 1, 1], [], []>} : vector<48x16xf32>, vector<16x48xf32>, vector<48x48xf32> -> vector<48x48xf32>
    %26 = vector.shape_cast %25 : vector<48x48xf32> to vector<2x24x48xf32>
    %27 = vector.extract_strided_slice %26 {offsets = [0, 0, 0], sizes = [2, 16, 16], strides = [1, 1, 1]} : vector<2x24x48xf32> to vector<2x16x16xf32>
    %28 = vector.extract_strided_slice %26 {offsets = [0, 1, 16], sizes = [2, 16, 16], strides = [1, 1, 1]} : vector<2x24x48xf32> to vector<2x16x16xf32>
    %29 = arith.addf %27, %28 : vector<2x16x16xf32>
    %30 = vector.extract_strided_slice %26 {offsets = [0, 2, 32], sizes = [2, 16, 16], strides = [1, 1, 1]} : vector<2x24x48xf32> to vector<2x16x16xf32>
    %31 = arith.addf %29, %30 : vector<2x16x16xf32>
    %32 = vector.shape_cast %20 : vector<1x16xf32> to vector<1x1x16xf32>
    %33 = vector.broadcast %32 : vector<1x1x16xf32> to vector<2x16x16xf32>
    %34 = arith.addf %31, %33 : vector<2x16x16xf32>
    %cst_16 = arith.constant 0.000000e+00 : f32
    %35 = vector.broadcast %cst_16 : f32 to vector<2x16x16xf32>
    %36 = arith.maximumf %34, %35 : vector<2x16x16xf32>
    %37 = vector.shape_cast %0 : vector<2x16x1xf32> to vector<32x1xf32>
    %c0_17 = arith.constant 0 : index
    %c0_18 = arith.constant 0 : index
    %38 = vector.load %arg5[%c0_17, %c0_18] : memref<1x16xf32, #tpu.memory_space<vmem>>, vector<1x16xf32>
    %cst_19 = arith.constant dense<0.000000e+00> : vector<32x16xf32>
    %39 = tpu.matmul %37, %38, %cst_19 {dimension_numbers = #tpu.dot_dimension_numbers<[1], [0], [0], [1], [0, 0, 1, 1], [], []>} : vector<32x1xf32>, vector<1x16xf32>, vector<32x16xf32> -> vector<32x16xf32>
    %40 = vector.shape_cast %39 : vector<32x16xf32> to vector<2x16x16xf32>
    %c0_20 = arith.constant 0 : index
    %c0_21 = arith.constant 0 : index
    %41 = vector.load %arg6[%c0_20, %c0_21] : memref<1x16xf32, #tpu.memory_space<vmem>>, vector<1x16xf32>
    %42 = vector.shape_cast %41 : vector<1x16xf32> to vector<1x1x16xf32>
    %43 = vector.broadcast %42 : vector<1x1x16xf32> to vector<2x16x16xf32>
    %44 = arith.addf %40, %43 : vector<2x16x16xf32>
    %45 = arith.addf %36, %44 : vector<2x16x16xf32>
    %cst_22 = arith.constant 0.000000e+00 : f32
    %46 = vector.broadcast %cst_22 : f32 to vector<2x16x16xf32>
    %47 = arith.maximumf %45, %46 : vector<2x16x16xf32>
    %c0_23 = arith.constant 0 : index
    %c0_24 = arith.constant 0 : index
    %48 = vector.load %arg7[%c0_23, %c0_24] : memref<16x48xf32, #tpu.memory_space<vmem>>, vector<16x48xf32>
    %c0_25 = arith.constant 0 : index
    %c0_26 = arith.constant 0 : index
    %49 = vector.load %arg8[%c0_25, %c0_26] : memref<1x16xf32, #tpu.memory_space<vmem>>, vector<1x16xf32>
    %cst_27 = arith.constant 0.000000e+00 : f32
    %50 = vector.broadcast %cst_27 : f32 to vector<2x4x16xf32>
    %cst_28 = arith.constant 0.000000e+00 : f32
    %51 = vector.broadcast %cst_28 : f32 to vector<2x4x16xf32>
    %52 = tpu.concatenate %50, %47, %51 in 1 : vector<2x4x16xf32>, vector<2x16x16xf32>, vector<2x4x16xf32> -> vector<2x24x16xf32>
    %53 = vector.shape_cast %52 : vector<2x24x16xf32> to vector<48x16xf32>
    %cst_29 = arith.constant dense<0.000000e+00> : vector<48x48xf32>
    %54 = tpu.matmul %53, %48, %cst_29 {dimension_numbers = #tpu.dot_dimension_numbers<[1], [0], [0], [1], [0, 0, 1, 1], [], []>} : vector<48x16xf32>, vector<16x48xf32>, vector<48x48xf32> -> vector<48x48xf32>
    %55 = vector.shape_cast %54 : vector<48x48xf32> to vector<2x24x48xf32>
    %56 = vector.extract_strided_slice %55 {offsets = [0, 0, 0], sizes = [2, 16, 16], strides = [1, 1, 1]} : vector<2x24x48xf32> to vector<2x16x16xf32>
    %57 = vector.extract_strided_slice %55 {offsets = [0, 2, 16], sizes = [2, 16, 16], strides = [1, 1, 1]} : vector<2x24x48xf32> to vector<2x16x16xf32>
    %58 = arith.addf %56, %57 : vector<2x16x16xf32>
    %59 = vector.extract_strided_slice %55 {offsets = [0, 4, 32], sizes = [2, 16, 16], strides = [1, 1, 1]} : vector<2x24x48xf32> to vector<2x16x16xf32>
    %60 = arith.addf %58, %59 : vector<2x16x16xf32>
    %61 = vector.shape_cast %49 : vector<1x16xf32> to vector<1x1x16xf32>
    %62 = vector.broadcast %61 : vector<1x1x16xf32> to vector<2x16x16xf32>
    %63 = arith.addf %60, %62 : vector<2x16x16xf32>
    %cst_30 = arith.constant 0.000000e+00 : f32
    %64 = vector.broadcast %cst_30 : f32 to vector<2x16x16xf32>
    %65 = arith.maximumf %63, %64 : vector<2x16x16xf32>
    %c0_31 = arith.constant 0 : index
    %c0_32 = arith.constant 0 : index
    %66 = vector.load %arg9[%c0_31, %c0_32] : memref<16x48xf32, #tpu.memory_space<vmem>>, vector<16x48xf32>
    %c0_33 = arith.constant 0 : index
    %c0_34 = arith.constant 0 : index
    %67 = vector.load %arg10[%c0_33, %c0_34] : memref<1x16xf32, #tpu.memory_space<vmem>>, vector<1x16xf32>
    %cst_35 = arith.constant 0.000000e+00 : f32
    %68 = vector.broadcast %cst_35 : f32 to vector<2x4x16xf32>
    %cst_36 = arith.constant 0.000000e+00 : f32
    %69 = vector.broadcast %cst_36 : f32 to vector<2x4x16xf32>
    %70 = tpu.concatenate %68, %65, %69 in 1 : vector<2x4x16xf32>, vector<2x16x16xf32>, vector<2x4x16xf32> -> vector<2x24x16xf32>
    %71 = vector.shape_cast %70 : vector<2x24x16xf32> to vector<48x16xf32>
    %cst_37 = arith.constant dense<0.000000e+00> : vector<48x48xf32>
    %72 = tpu.matmul %71, %66, %cst_37 {dimension_numbers = #tpu.dot_dimension_numbers<[1], [0], [0], [1], [0, 0, 1, 1], [], []>} : vector<48x16xf32>, vector<16x48xf32>, vector<48x48xf32> -> vector<48x48xf32>
    %73 = vector.shape_cast %72 : vector<48x48xf32> to vector<2x24x48xf32>
    %74 = vector.extract_strided_slice %73 {offsets = [0, 0, 0], sizes = [2, 16, 16], strides = [1, 1, 1]} : vector<2x24x48xf32> to vector<2x16x16xf32>
    %75 = vector.extract_strided_slice %73 {offsets = [0, 2, 16], sizes = [2, 16, 16], strides = [1, 1, 1]} : vector<2x24x48xf32> to vector<2x16x16xf32>
    %76 = arith.addf %74, %75 : vector<2x16x16xf32>
    %77 = vector.extract_strided_slice %73 {offsets = [0, 4, 32], sizes = [2, 16, 16], strides = [1, 1, 1]} : vector<2x24x48xf32> to vector<2x16x16xf32>
    %78 = arith.addf %76, %77 : vector<2x16x16xf32>
    %79 = vector.shape_cast %67 : vector<1x16xf32> to vector<1x1x16xf32>
    %80 = vector.broadcast %79 : vector<1x1x16xf32> to vector<2x16x16xf32>
    %81 = arith.addf %78, %80 : vector<2x16x16xf32>
    %cst_38 = arith.constant 0.000000e+00 : f32
    %82 = vector.broadcast %cst_38 : f32 to vector<2x16x16xf32>
    %83 = arith.maximumf %81, %82 : vector<2x16x16xf32>
    %84 = arith.addf %83, %47 : vector<2x16x16xf32>
    %cst_39 = arith.constant 0.000000e+00 : f32
    %85 = vector.broadcast %cst_39 : f32 to vector<2x16x16xf32>
    %86 = arith.maximumf %84, %85 : vector<2x16x16xf32>
    %c0_40 = arith.constant 0 : index
    %c0_41 = arith.constant 0 : index
    %87 = vector.load %arg11[%c0_40, %c0_41] : memref<16x96xf32, #tpu.memory_space<vmem>>, vector<16x96xf32>
    %c0_42 = arith.constant 0 : index
    %c0_43 = arith.constant 0 : index
    %88 = vector.load %arg12[%c0_42, %c0_43] : memref<1x32xf32, #tpu.memory_space<vmem>>, vector<1x32xf32>
    %cst_44 = arith.constant 0.000000e+00 : f32
    %89 = vector.broadcast %cst_44 : f32 to vector<2x8x16xf32>
    %90 = tpu.concatenate %89, %86 in 1 : vector<2x8x16xf32>, vector<2x16x16xf32> -> vector<2x24x16xf32>
    %91 = vector.shape_cast %90 : vector<2x24x16xf32> to vector<48x16xf32>
    %cst_45 = arith.constant dense<0.000000e+00> : vector<48x96xf32>
    %92 = tpu.matmul %91, %87, %cst_45 {dimension_numbers = #tpu.dot_dimension_numbers<[1], [0], [0], [1], [0, 0, 1, 1], [], []>} : vector<48x16xf32>, vector<16x96xf32>, vector<48x96xf32> -> vector<48x96xf32>
    %93 = vector.shape_cast %92 : vector<48x96xf32> to vector<2x24x96xf32>
    %94 = vector.extract_strided_slice %93 {offsets = [0, 0, 0], sizes = [2, 16, 32], strides = [1, 1, 1]} : vector<2x24x96xf32> to vector<2x16x32xf32>
    %95 = vector.extract_strided_slice %93 {offsets = [0, 4, 32], sizes = [2, 16, 32], strides = [1, 1, 1]} : vector<2x24x96xf32> to vector<2x16x32xf32>
    %96 = arith.addf %94, %95 : vector<2x16x32xf32>
    %97 = vector.extract_strided_slice %93 {offsets = [0, 8, 64], sizes = [2, 16, 32], strides = [1, 1, 1]} : vector<2x24x96xf32> to vector<2x16x32xf32>
    %98 = arith.addf %96, %97 : vector<2x16x32xf32>
    %99 = vector.shape_cast %88 : vector<1x32xf32> to vector<1x1x32xf32>
    %100 = vector.broadcast %99 : vector<1x1x32xf32> to vector<2x16x32xf32>
    %101 = arith.addf %98, %100 : vector<2x16x32xf32>
    %cst_46 = arith.constant 0.000000e+00 : f32
    %102 = vector.broadcast %cst_46 : f32 to vector<2x16x32xf32>
    %103 = arith.maximumf %101, %102 : vector<2x16x32xf32>
    %c0_47 = arith.constant 0 : index
    %c0_48 = arith.constant 0 : index
    %104 = vector.load %arg13[%c0_47, %c0_48] : memref<32x96xf32, #tpu.memory_space<vmem>>, vector<32x96xf32>
    %c0_49 = arith.constant 0 : index
    %c0_50 = arith.constant 0 : index
    %105 = vector.load %arg14[%c0_49, %c0_50] : memref<1x32xf32, #tpu.memory_space<vmem>>, vector<1x32xf32>
    %cst_51 = arith.constant 0.000000e+00 : f32
    %106 = vector.broadcast %cst_51 : f32 to vector<2x8x32xf32>
    %107 = tpu.concatenate %106, %103 in 1 : vector<2x8x32xf32>, vector<2x16x32xf32> -> vector<2x24x32xf32>
    %108 = vector.shape_cast %107 : vector<2x24x32xf32> to vector<48x32xf32>
    %cst_52 = arith.constant dense<0.000000e+00> : vector<48x96xf32>
    %109 = tpu.matmul %108, %104, %cst_52 {dimension_numbers = #tpu.dot_dimension_numbers<[1], [0], [0], [1], [0, 0, 1, 1], [], []>} : vector<48x32xf32>, vector<32x96xf32>, vector<48x96xf32> -> vector<48x96xf32>
    %110 = vector.shape_cast %109 : vector<48x96xf32> to vector<2x24x96xf32>
    %111 = vector.extract_strided_slice %110 {offsets = [0, 0, 0], sizes = [2, 16, 32], strides = [1, 1, 1]} : vector<2x24x96xf32> to vector<2x16x32xf32>
    %112 = vector.extract_strided_slice %110 {offsets = [0, 4, 32], sizes = [2, 16, 32], strides = [1, 1, 1]} : vector<2x24x96xf32> to vector<2x16x32xf32>
    %113 = arith.addf %111, %112 : vector<2x16x32xf32>
    %114 = vector.extract_strided_slice %110 {offsets = [0, 8, 64], sizes = [2, 16, 32], strides = [1, 1, 1]} : vector<2x24x96xf32> to vector<2x16x32xf32>
    %115 = arith.addf %113, %114 : vector<2x16x32xf32>
    %116 = vector.shape_cast %105 : vector<1x32xf32> to vector<1x1x32xf32>
    %117 = vector.broadcast %116 : vector<1x1x32xf32> to vector<2x16x32xf32>
    %118 = arith.addf %115, %117 : vector<2x16x32xf32>
    %cst_53 = arith.constant 0.000000e+00 : f32
    %119 = vector.broadcast %cst_53 : f32 to vector<2x16x32xf32>
    %120 = arith.maximumf %118, %119 : vector<2x16x32xf32>
    %121 = vector.shape_cast %86 : vector<2x16x16xf32> to vector<32x16xf32>
    %c0_54 = arith.constant 0 : index
    %c0_55 = arith.constant 0 : index
    %122 = vector.load %arg15[%c0_54, %c0_55] : memref<16x32xf32, #tpu.memory_space<vmem>>, vector<16x32xf32>
    %cst_56 = arith.constant dense<0.000000e+00> : vector<32x32xf32>
    %123 = tpu.matmul %121, %122, %cst_56 {dimension_numbers = #tpu.dot_dimension_numbers<[1], [0], [0], [1], [0, 0, 1, 1], [], []>} : vector<32x16xf32>, vector<16x32xf32>, vector<32x32xf32> -> vector<32x32xf32>
    %124 = vector.shape_cast %123 : vector<32x32xf32> to vector<2x16x32xf32>
    %c0_57 = arith.constant 0 : index
    %c0_58 = arith.constant 0 : index
    %125 = vector.load %arg16[%c0_57, %c0_58] : memref<1x32xf32, #tpu.memory_space<vmem>>, vector<1x32xf32>
    %126 = vector.shape_cast %125 : vector<1x32xf32> to vector<1x1x32xf32>
    %127 = vector.broadcast %126 : vector<1x1x32xf32> to vector<2x16x32xf32>
    %128 = arith.addf %124, %127 : vector<2x16x32xf32>
    %129 = arith.addf %120, %128 : vector<2x16x32xf32>
    %cst_59 = arith.constant 0.000000e+00 : f32
    %130 = vector.broadcast %cst_59 : f32 to vector<2x16x32xf32>
    %131 = arith.maximumf %129, %130 : vector<2x16x32xf32>
    %cst_60 = arith.constant dense<0.000000e+00> : vector<2x32xf32>
    %132 = vector.multi_reduction <add>, %131, %cst_60 [1] : vector<2x16x32xf32> to vector<2x32xf32>
    %cst_61 = arith.constant 1.600000e+01 : f32
    %133 = vector.broadcast %cst_61 : f32 to vector<2x32xf32>
    %134 = arith.divf %132, %133 : vector<2x32xf32>
    %c0_62 = arith.constant 0 : index
    %c0_63 = arith.constant 0 : index
    %135 = vector.load %arg17[%c0_62, %c0_63] : memref<32x64xf32, #tpu.memory_space<vmem>>, vector<32x64xf32>
    %cst_64 = arith.constant dense<0.000000e+00> : vector<2x64xf32>
    %136 = tpu.matmul %134, %135, %cst_64 {dimension_numbers = #tpu.dot_dimension_numbers<[1], [0], [0], [1], [0, 0, 1, 1], [], []>} : vector<2x32xf32>, vector<32x64xf32>, vector<2x64xf32> -> vector<2x64xf32>
    %c0_65 = arith.constant 0 : index
    %c0_66 = arith.constant 0 : index
    %137 = vector.load %arg18[%c0_65, %c0_66] : memref<1x64xf32, #tpu.memory_space<vmem>>, vector<1x64xf32>
    %138 = vector.broadcast %137 : vector<1x64xf32> to vector<2x64xf32>
    %139 = arith.addf %136, %138 : vector<2x64xf32>
    %c0_67 = arith.constant 0 : index
    %c0_68 = arith.constant 0 : index
    %140 = vector.load %arg19[%c0_67, %c0_68] : memref<2x64xf32, #tpu.memory_space<vmem>>, vector<2x64xf32>
    tpu.vector_store %arg19[%c0_67, %c0_68], %139 {strides = array<i32>} : memref<2x64xf32, #tpu.memory_space<vmem>>, vector<2x64xf32>,
    return
  }
}

</mosaic_0001>

<bundles_post_ra>
// kernel: tpu_custom_call.1
= control target key start
LH: loop header
LB: loop body
LE: loop exit
PB: predicated region body
PF: predicated region fallthrough
CT: control target
= control target key end

     0   :  { %s2825_s0 = inlined_call_operand.vmem [shape: f32[2,16,1], index: 0, kind: input, shape index: {}]   ;;  %s2826_s1 = inlined_call_operand.hbm [shape: f32[1,48], index: 1, kind: input, shape index: {}]   ;;  %s2827_s2 = inlined_call_operand.hbm [shape: f32[1,16], index: 2, kind: input, shape index: {}]   ;;  %s2828_s3 = inlined_call_operand.hbm [shape: f32[16,48], index: 3, kind: input, shape index: {}]   ;;  %s2829_s4 = inlined_call_operand.hbm [shape: f32[1,16], index: 4, kind: input, shape index: {}]   ;;  %s2830_s5 = inlined_call_operand.hbm [shape: f32[1,16], index: 5, kind: input, shape index: {}]   ;;  %s2831_s6 = inlined_call_operand.hbm [shape: f32[1,16], index: 6, kind: input, shape index: {}]   ;;  %s2832_s7 = inlined_call_operand.hbm [shape: f32[16,48], index: 7, kind: input, shape index: {}]   ;;  %s2833_s8 = inlined_call_operand.hbm [shape: f32[1,16], index: 8, kind: input, shape index: {}]   ;;  %s2834_s9 = inlined_call_operand.hbm [shape: f32[16,48], index: 9, kind: input, shape index: {}]   ;;  %s2835_s10 = inlined_call_operand.vmem [shape: f32[1,16], index: 10, kind: input, shape index: {}]   ;;  %s2836_s11 = inlined_call_operand.hbm [shape: f32[16,96], index: 11, kind: input, shape index: {}]   ;;  %s2837_s12 = inlined_call_operand.vmem [shape: f32[1,32], index: 12, kind: input, shape index: {}]   ;;  %s2838_s13 = inlined_call_operand.vmem [shape: f32[32,96], index: 13, kind: input, shape index: {}]   ;;  %s2839_s14 = inlined_call_operand.vmem [shape: f32[1,32], index: 14, kind: input, shape index: {}]   ;;  %s2840_s15 = inlined_call_operand.vmem [shape: f32[16,32], index: 15, kind: input, shape index: {}]   ;;  %s2841_s16 = inlined_call_operand.vmem [shape: f32[1,32], index: 16, kind: input, shape index: {}]   ;;  %s2842_s17 = inlined_call_operand.vmem [shape: f32[32,64], index: 17, kind: input, shape index: {}]   ;;  %s2843_s18 = inlined_call_operand.vmem [shape: f32[1,64], index: 18, kind: input, shape index: {}]   ;;  %s2844_s19 = inlined_call_operand.hbm [shape: f32[2,64], index: 19, kind: output, shape index: {}]  }
   0x1   :  { %2849 = sst [smem:[#allocation27_spill]] %s2825_s0 }
   0x2   :  { %2850 = sst [smem:[#allocation28_spill]] %s2826_s1 }
   0x3   :  { %2851 = sst [smem:[#allocation29_spill]] %s2827_s2 }
   0x4   :  { %2852 = sst [smem:[#allocation30_spill]] %s2828_s3 }
   0x5   :  { %24 = vsyncpa [#allocation3], 0 }
   0x6   :  { %25 = vsyncpa [#allocation6], 0 }
   0x7   :  { %26 = vsyncpa [#allocation9], 0 }
   0x8   :  { %27 = vsyncpa [#allocation12], 0 }
   0x9   :  { %28 = vsyncpa [#allocation15], 0 }
   0xa   :  { %29 = vsyncpa [#allocation18], 0 }
   0xb   :  { %30 = vsyncpa [#allocation4], 0  ;;  %s2263_s0 = smov [#allocation5]   ;;  %s2264_s20 = smov [#allocation8]  }
   0xc   :  { %s49_s30 = sshll.u32 %s2263_s0, 4  ;;  %s71_s21 = sshll.u32 %s2264_s20, 4  ;;  %s50_s30 = int_to_ptr.vmem [resolvable:$true] %s49_s30  ;;  %s72_s21 = int_to_ptr.vmem [resolvable:$true] %s71_s21 }
   0xd   :  { %s2853_s2 = sld [smem:[#allocation29_spill]] }
  0x13   :  { %s2007_s23 = scalar_lea.hbm %s2853_s2, 16 }
  0x14   :  { %p2008_p0 = scmp.ne.s32.totalorder %s2853_s2, %s2007_s23  ;;  %p2011_p1 = scmp.lt.u32.totalorder %s2007_s23, %s2853_s2 }
  0x16   :  { %p2013_p2 = pnand %p2011_p1, %p2008_p0 }
  0x18   :  { %2016 = shalt.err (!%p2013_p2)
}
  0x19   :  { %s2017_s27 = scalar_lea.vmem %s50_s30, 16  ;;  %s2021_s28 = scalar_lea.vmem %s50_s30, 32 }
  0x1a   :  { %p2018_p3 = scmp.ne.s32.totalorder %s50_s30, %s2017_s27  ;;  %p2022_p4 = scmp.lt.s32.totalorder %s50_s30, %s50_s30 }
  0x1b   :  { %p2023_p5 = scmp.lt.s32.totalorder %s2021_s28, %s2017_s27 }
  0x1d   :  { %p2024_p6 = por %p2023_p5, %p2022_p4 }
  0x1f   :  { %p2025_p7 = pnand %p2024_p6, %p2018_p3 }
  0x21   :  { %2028 = shalt.err (!%p2025_p7)
}
  0x22   :  { %52 = dma.hbm_to_vmem [thread:$0]  %s2853_s2, 16, %s50_s30, [#allocation6]  }
  0x23   :  { %s2029_s22 = scalar_lea.hbm %s2829_s4, 16 }
  0x24   :  { %p2030_p8 = scmp.ne.s32.totalorder %s2829_s4, %s2029_s22  ;;  %p2033_p9 = scmp.lt.u32.totalorder %s2029_s22, %s2829_s4 }
  0x26   :  { %p2035_p10 = pnand %p2033_p9, %p2030_p8 }
  0x28   :  { %2038 = shalt.err (!%p2035_p10)
}
  0x29   :  { %s2039_s26 = scalar_lea.vmem %s72_s21, 16  ;;  %s2043_s27 = scalar_lea.vmem %s72_s21, 32 }
  0x2a   :  { %p2040_p11 = scmp.ne.s32.totalorder %s72_s21, %s2039_s26  ;;  %p2044_p12 = scmp.lt.s32.totalorder %s72_s21, %s72_s21 }
  0x2b   :  { %p2045_p13 = scmp.lt.s32.totalorder %s2043_s27, %s2039_s26 }
  0x2d   :  { %p2046_p0 = por %p2045_p13, %p2044_p12 }
  0x2f   :  { %p2047_p1 = pnand %p2046_p0, %p2040_p11 }
  0x31   :  { %2050 = shalt.err (!%p2047_p1)
}
  0x32   :  { %74 = dma.hbm_to_vmem [thread:$0]  %s2829_s4, 16, %s72_s21, [#allocation9]  }
  0x33   :  { %s2265_s28 = smov [#allocation11]   ;;  %s2266_s0 = smov [#allocation14]  }
  0x34   :  { %s91_s29 = sshll.u32 %s2265_s28, 4  ;;  %s113_s20 = sshll.u32 %s2266_s0, 4  ;;  %s92_s29 = int_to_ptr.vmem [resolvable:$true] %s91_s29  ;;  %s114_s20 = int_to_ptr.vmem [resolvable:$true] %s113_s20 }
  0x35   :  { %s2051_s24 = scalar_lea.hbm %s2831_s6, 16 }
  0x36   :  { %p2052_p2 = scmp.ne.s32.totalorder %s2831_s6, %s2051_s24  ;;  %p2055_p3 = scmp.lt.u32.totalorder %s2051_s24, %s2831_s6 }
  0x38   :  { %p2057_p4 = pnand %p2055_p3, %p2052_p2 }
  0x3a   :  { %2060 = shalt.err (!%p2057_p4)
}
  0x3b   :  { %s2061_s4 = scalar_lea.vmem %s92_s29, 16  ;;  %s2065_s21 = scalar_lea.vmem %s92_s29, 32 }
  0x3c   :  { %p2062_p5 = scmp.ne.s32.totalorder %s92_s29, %s2061_s4  ;;  %p2066_p6 = scmp.lt.s32.totalorder %s92_s29, %s92_s29 }
  0x3d   :  { %p2067_p7 = scmp.lt.s32.totalorder %s2065_s21, %s2061_s4 }
  0x3f   :  { %p2068_p8 = por %p2067_p7, %p2066_p6 }
  0x41   :  { %p2069_p9 = pnand %p2068_p8, %p2062_p5 }
  0x43   :  { %2072 = shalt.err (!%p2069_p9)
}
  0x44   :  { %94 = dma.hbm_to_vmem [thread:$0]  %s2831_s6, 16, %s92_s29, [#allocation12]  }
  0x45   :  { %s2073_s0 = scalar_lea.hbm %s2833_s8, 16 }
  0x46   :  { %p2074_p10 = scmp.ne.s32.totalorder %s2833_s8, %s2073_s0  ;;  %p2077_p11 = scmp.lt.u32.totalorder %s2073_s0, %s2833_s8 }
  0x48   :  { %p2079_p12 = pnand %p2077_p11, %p2074_p10 }
  0x4a   :  { %2082 = shalt.err (!%p2079_p12)
}
  0x4b   :  { %s2083_s25 = scalar_lea.vmem %s114_s20, 16  ;;  %s2087_s3 = scalar_lea.vmem %s114_s20, 32 }
  0x4c   :  { %p2084_p13 = scmp.ne.s32.totalorder %s114_s20, %s2083_s25  ;;  %p2088_p0 = scmp.lt.s32.totalorder %s114_s20, %s114_s20 }
  0x4d   :  { %p2089_p1 = scmp.lt.s32.totalorder %s2087_s3, %s2083_s25 }
  0x4f   :  { %p2090_p2 = por %p2089_p1, %p2088_p0 }
  0x51   :  { %p2091_p3 = pnand %p2090_p2, %p2084_p13 }
  0x53   :  { %2094 = shalt.err (!%p2091_p3)
}
  0x54   :  { %116 = dma.hbm_to_vmem [thread:$0]  %s2833_s8, 16, %s114_s20, [#allocation15]  }
  0x55   :  { %s2267_s26 = smov [#allocation2]   ;;  %s2268_s21 = smov [#allocation7]  }
  0x56   :  { %s39_s4 = sshll.u32 %s2267_s26, 4  ;;  %s58_s27 = sshll.u32 %s2268_s21, 4  ;;  %s40_s4 = int_to_ptr.vmem [resolvable:$true] %s39_s4  ;;  %s2430_s27 = int_to_ptr.vmem [resolvable:$true] %s58_s27 }
  0x57   :  { %s2854_s28 = sld [smem:[#allocation28_spill]] }
  0x5d   :  { %s2095_s0 = scalar_lea.hbm %s2854_s28, 16 }
  0x5e   :  { %p2096_p4 = scmp.ne.s32.totalorder %s2854_s28, %s2095_s0  ;;  %p2099_p5 = scmp.lt.u32.totalorder %s2095_s0, %s2854_s28 }
  0x60   :  { %p2101_p6 = pnand %p2099_p5, %p2096_p4 }
  0x62   :  { %2104 = shalt.err (!%p2101_p6)
}
  0x63   :  { %s2105_s8 = scalar_lea.vmem %s40_s4, 16  ;;  %s2109_s20 = scalar_lea.vmem %s40_s4, 32 }
  0x64   :  { %p2106_p7 = scmp.ne.s32.totalorder %s40_s4, %s2105_s8  ;;  %p2110_p8 = scmp.lt.s32.totalorder %s40_s4, %s40_s4 }
  0x65   :  { %p2111_p9 = scmp.lt.s32.totalorder %s2109_s20, %s2105_s8 }
  0x67   :  { %p2112_p10 = por %p2111_p9, %p2110_p8 }
  0x69   :  { %p2113_p11 = pnand %p2112_p10, %p2106_p7 }
  0x6b   :  { %2116 = shalt.err (!%p2113_p11)
}
  0x6c   :  { %42 = dma.hbm_to_vmem [thread:$0]  %s2854_s28, 16, %s40_s4, [#allocation3]  }
  0x6d   :  { %s2855_s26 = sld [smem:[#allocation30_spill]] }
  0x73   :  { %s2117_s21 = scalar_lea.hbm %s2855_s26, 256 }
  0x74   :  { %p2118_p12 = scmp.ne.s32.totalorder %s2855_s26, %s2117_s21  ;;  %p2121_p13 = scmp.lt.u32.totalorder %s2117_s21, %s2855_s26 }
  0x76   :  { %p2123_p0 = pnand %p2121_p13, %p2118_p12 }
  0x78   :  { %2126 = shalt.err (!%p2123_p0)
}
  0x79   :  { %s2127_s22 = scalar_lea.vmem %s2430_s27, 256  ;;  %p2132_p2 = scmp.lt.s32.totalorder %s2430_s27, %s2430_s27 }
  0x7a   :  { %p2128_p1 = scmp.ne.s32.totalorder %s2430_s27, %s2127_s22  ;;  %p2133_p3 = scmp.lt.s32.totalorder %s2127_s22, %s2127_s22 }
  0x7c   :  { %p2134_p4 = por %p2133_p3, %p2132_p2 }
  0x7e   :  { %p2135_p5 = pnand %p2134_p4, %p2128_p1 }
  0x80   :  { %2138 = shalt.err (!%p2135_p5)
}
  0x81   :  { %s2269_s4 = smov 128   ;;  %s2270_s28 = smov 8  }
  0x82   :  { %64 = dma.hbm_to_vmem [thread:$0]  %s2855_s26, 256, %s2430_s27, [#allocation6], %s2269_s4, %s2269_s4, %s2270_s28  }
  0x83   :  { %s2271_s8 = smov [#allocation10]   ;;  %s2272_s25 = smov [#allocation13]  }
  0x84   :  { %s81_s20 = sshll.u32 %s2271_s8, 4  ;;  %s100_s3 = sshll.u32 %s2272_s25, 4  ;;  %s82_s20 = int_to_ptr.vmem [resolvable:$true] %s81_s20  ;;  %s2464_s3 = int_to_ptr.vmem [resolvable:$true] %s100_s3 }
  0x85   :  { %s2139_s21 = scalar_lea.hbm %s2830_s5, 16 }
  0x86   :  { %p2140_p6 = scmp.ne.s32.totalorder %s2830_s5, %s2139_s21  ;;  %p2143_p7 = scmp.lt.u32.totalorder %s2139_s21, %s2830_s5 }
  0x88   :  { %p2145_p8 = pnand %p2143_p7, %p2140_p6 }
  0x8a   :  { %2148 = shalt.err (!%p2145_p8)
}
  0x8b   :  { %s2149_s27 = scalar_lea.vmem %s82_s20, 16  ;;  %s2153_s26 = scalar_lea.vmem %s82_s20, 32 }
  0x8c   :  { %p2150_p9 = scmp.ne.s32.totalorder %s82_s20, %s2149_s27  ;;  %p2154_p10 = scmp.lt.s32.totalorder %s82_s20, %s82_s20 }
  0x8d   :  { %p2155_p11 = scmp.lt.s32.totalorder %s2153_s26, %s2149_s27 }
  0x8f   :  { %p2156_p12 = por %p2155_p11, %p2154_p10 }
  0x91   :  { %p2157_p13 = pnand %p2156_p12, %p2150_p9 }
  0x93   :  { %2160 = shalt.err (!%p2157_p13)
}
  0x94   :  { %84 = dma.hbm_to_vmem [thread:$0]  %s2830_s5, 16, %s82_s20, [#allocation9]  }
  0x95   :  { %s2161_s25 = scalar_lea.hbm %s2832_s7, 256 }
  0x96   :  { %p2162_p0 = scmp.ne.s32.totalorder %s2832_s7, %s2161_s25  ;;  %p2165_p1 = scmp.lt.u32.totalorder %s2161_s25, %s2832_s7 }
  0x98   :  { %p2167_p2 = pnand %p2165_p1, %p2162_p0 }
  0x9a   :  { %2170 = shalt.err (!%p2167_p2)
}
  0x9b   :  { %s2171_s2 = scalar_lea.vmem %s2464_s3, 256  ;;  %p2176_p4 = scmp.lt.s32.totalorder %s2464_s3, %s2464_s3 }
  0x9c   :  { %p2172_p3 = scmp.ne.s32.totalorder %s2464_s3, %s2171_s2  ;;  %p2177_p5 = scmp.lt.s32.totalorder %s2171_s2, %s2171_s2 }
  0x9e   :  { %p2178_p6 = por %p2177_p5, %p2176_p4 }
  0xa0   :  { %p2179_p7 = pnand %p2178_p6, %p2172_p3 }
  0xa2   :  { %2182 = shalt.err (!%p2179_p7)
}
  0xa3   :  { %106 = dma.hbm_to_vmem [thread:$0]  %s2832_s7, 256, %s2464_s3, [#allocation12], %s2269_s4, %s2269_s4, %s2270_s28  }
  0xa4   :  { %s2273_s0 = smov [#allocation16]   ;;  %s2274_s27 = smov [#allocation17]  }
  0xa5   :  { %s122_s1 = sshll.u32 %s2273_s0, 4  ;;  %s136_s26 = sshll.u32 %s2274_s27, 4  ;;  %s123_s1 = int_to_ptr.vmem [resolvable:$true] %s122_s1  ;;  %s2498_s26 = int_to_ptr.vmem [resolvable:$true] %s136_s26 }
  0xa6   :  { %s2183_s23 = scalar_lea.hbm %s2834_s9, 256 }
  0xa7   :  { %p2184_p8 = scmp.ne.s32.totalorder %s2834_s9, %s2183_s23  ;;  %p2187_p9 = scmp.lt.u32.totalorder %s2183_s23, %s2834_s9 }
  0xa9   :  { %p2189_p10 = pnand %p2187_p9, %p2184_p8 }
  0xab   :  { %2192 = shalt.err (!%p2189_p10)
}
  0xac   :  { %s2193_s7 = scalar_lea.vmem %s123_s1, 256  ;;  %p2198_p12 = scmp.lt.s32.totalorder %s123_s1, %s123_s1 }
  0xad   :  { %p2194_p11 = scmp.ne.s32.totalorder %s123_s1, %s2193_s7  ;;  %p2199_p13 = scmp.lt.s32.totalorder %s2193_s7, %s2193_s7 }
  0xaf   :  { %p2200_p0 = por %p2199_p13, %p2198_p12 }
  0xb1   :  { %p2201_p1 = pnand %p2200_p0, %p2194_p11 }
  0xb3   :  { %2204 = shalt.err (!%p2201_p1)
}
  0xb4   :  { %128 = dma.hbm_to_vmem [thread:$0]  %s2834_s9, 256, %s123_s1, [#allocation15], %s2269_s4, %s2269_s4, %s2270_s28  }
  0xb5   :  { %s2205_s5 = scalar_lea.hbm %s2836_s11, 256 }
  0xb6   :  { %p2206_p2 = scmp.ne.s32.totalorder %s2836_s11, %s2205_s5  ;;  %p2209_p3 = scmp.lt.u32.totalorder %s2205_s5, %s2836_s11 }
  0xb8   :  { %p2211_p4 = pnand %p2209_p3, %p2206_p2 }
  0xba   :  { %2214 = shalt.err (!%p2211_p4)
}
  0xbb   :  { %s2215_s24 = scalar_lea.vmem %s2498_s26, 256  ;;  %p2220_p6 = scmp.lt.s32.totalorder %s2498_s26, %s2498_s26 }
  0xbc   :  { %p2216_p5 = scmp.ne.s32.totalorder %s2498_s26, %s2215_s24  ;;  %p2221_p7 = scmp.lt.s32.totalorder %s2215_s24, %s2215_s24 }
  0xbe   :  { %p2222_p8 = por %p2221_p7, %p2220_p6 }
  0xc0   :  { %p2223_p9 = pnand %p2222_p8, %p2216_p5 }
  0xc2   :  { %2226 = shalt.err (!%p2223_p9)
}
  0xc3   :  { %142 = dma.hbm_to_vmem [thread:$0]  %s2836_s11, 256, %s2498_s26, [#allocation18], %s2269_s4, %s2269_s4, %s2270_s28  }
  0xc4   :  { %2249 = dma.done.wait [#allocation3], 16  }
  0xc5   :  { %2250 = vsyncadd [#allocation3], 4294967280 }
  0xc6   :  { %2251 = dma.done.wait [#allocation6], 272  }
  0xc7   :  { %2252 = vsyncadd [#allocation6], 4294967024 }
  0xc8   :  { %2253 = dma.done.wait [#allocation9], 32  }
  0xc9   :  { %2254 = vsyncadd [#allocation9], 4294967264 }
  0xca   :  { %2255 = dma.done.wait [#allocation12], 272  }
  0xcb   :  { %2256 = vsyncadd [#allocation12], 4294967024 }
  0xcc   :  { %2257 = dma.done.wait [#allocation15], 272  }
  0xcd   :  { %2258 = vsyncadd [#allocation15], 4294967024 }
  0xce   :  { %2259 = dma.done.wait [#allocation18], 256  }
  0xcf   :  { %2260 = vsyncadd [#allocation18], 4294967040  ;;  %vm229_vm0 = vcmask 1040384   ;;  %v191_v0 = vld [vmem:[#allocation2] sm:$0x1]  ;;  %s2856_s25 = sld [smem:[#allocation27_spill]] }
  0xd0   :  { %vm197_vm1 = vcmask 1041408   ;;  %1845 = vmatprep.subr.msk.mxu0 %vm229_vm0, %v191_v0  ;;  %vm212_vm2 = vcmask 7168   ;;  %vm361_vm3 = vcmask 1045504   ;;  %v402_v16 = vld [vmem:[#allocation7] sm:$0xff]  ;;  %v403_v17 = vld [vmem:[#allocation7 + $0x8] sm:$0xff]  ;;  %vm334_vm4 = vcmask 1046528  }
  0xd1   :  { %1846 = vmatpush3.msk.msra.mxu0 %vm229_vm0, %v191_v0  ;;  %v1954_v21 = vpack.c.bf16 %v403_v17, %v402_v16  ;;  %s2275_s7 = smov 96   ;;  %s2276_s3 = smov 112   ;;  %v607_v44 = vld [vmem:[#allocation10] sm:$0x1]  ;;  %v1735_v48 = vld [vmem:[#allocation5] ss:$0 sm:$0xff] }
  0xd2   :  { %1869 = vmatprep.subr.msk.mxu0 %vm229_vm0, %v607_v44  ;;  %vm423_vm5 = vcmask 130048   ;;  %vm730_vm6 = vcmask 1043456   ;;  %s2278_s8 = smov 64   ;;  %vm1320_vm7 = vcmask 261120   ;;  %vm2280_vm8 = vmmov 0  }
  0xd3   :  { %1955 = vmatprep.subr.bf16.mxu1 %v1954_v21  ;;  %vm1632_vm9 = vcmask 1041409   ;;  %vm1706_vm10 = vcmask 517120  }
  0xd4   :  { %1957 = vmatpush3.bf16.msra.mxu1 %v1954_v21 }
  0xd5   :  { %v187_v1 = vld [vmem:[%s2856_s25] sm:$0xff]  ;;  %v2541_v2 = vld [vmem:[%s2856_s25 + $0x8] sm:$0xff]  ;;  %v2548_v5 = vld [vmem:[%s2856_s25 + $0x10] sm:$0xff] }
  0xd6   :  { %v198_v3 = vrot.slane %v187_v1, 6  ;;  %v199_v4 = vrot.slane %v2541_v2, 6  ;;  %v2553_v6 = vld [vmem:[%s2856_s25 + $0x18] sm:$0xff]  ;;  %v201_v7 = vrot.slane %v2548_v5, 6 }
  0xd7   :  { %v202_v11 = vrot.slane %v2553_v6, 6 }
  0xd8   :  { %v208_v8 = vsel %vm197_vm1, 0.0, %v198_v3  ;;  %v200_v9 = vsel %vm197_vm1, %v198_v3, %v199_v4  ;;  %v210_v10 = vsel %vm197_vm1, %v199_v4, 0.0  ;;  %v209_v12 = vsel %vm197_vm1, 0.0, %v201_v7 }
  0xd9   :  { %1847 = vmatprep.mubr.msk.f32.mxu0 %vm212_vm2, %v208_v8  ;;  %v203_v13 = vsel %vm197_vm1, %v201_v7, %v202_v11  ;;  %v211_v14 = vsel %vm197_vm1, %v202_v11, 0.0 }
  0xda   :  { %1848 = vmatmul.mubr.msk.f32.vlgmr.msra.gmra.mrb[0].mxu0 %vm212_vm2, %v200_v9 }
  0xdb   :  { %1850 = vmatprep.mubr.msk.f32.mxu0 %vm212_vm2, %v210_v10  ;;  %1870 = vmatpush3.msk.msra.mxu0 %vm229_vm0, %v607_v44 }
  0xde   :  { %1851 = vmatmul.mubr.msk.f32.gmra.mrb[2].mxu0 %vm212_vm2, %v209_v12 }
  0xdf   :  { %1853 = vmatprep.mubr.msk.f32.mxu0 %vm212_vm2, %v203_v13 }
  0xe2   :  { %1854 = vmatmul.mubr.msk.f32.gmra.mrb[4].mxu0 %vm212_vm2, %v211_v14 }
  0xe3   :  { %1871 = vmatprep.mubr.msk.f32.mxu0 %vm212_vm2, %v187_v1 }
  0xe6   :  { %1872 = vmatmul.mubr.msk.f32.vlgmr.msra.gmra.mrb[6].mxu0 %vm212_vm2, %v2541_v2 }
  0xe7   :  { %1874 = vmatprep.mubr.msk.f32.mxu0 %vm212_vm2, %v2548_v5 }
  0xea   :  { %1875 = vmatmul.mubr.msk.f32.gmra.mrb[8].mxu0 %vm212_vm2, %v2553_v6 }
 0x1ad   :  { %v1849_v15 = vpop.f32.mrb[0].mxu0 }
 0x1ae   :  { %v336_v18 = vrot.slane %v1849_v15, 1  ;;  %v363_v19 = vrot.slane %v1849_v15, 2  ;;  %v299_v20 = vpop.f32.mrb[1].mxu0 }
 0x1af   :  { %v335_v22 = vrot.slane %v299_v20, 1  ;;  %v362_v23 = vrot.slane %v299_v20, 2 }
 0x1b1   :  { %v1852_v24 = vpop.f32.mrb[2].mxu0  ;;  %v364_v25 = vsel %vm361_vm3, %v362_v23, %v363_v19  ;;  %v337_v26 = vsel %vm334_vm4, %v335_v22, %v336_v18 }
 0x1b2   :  { %372 = vrot.lane.b32.xlu1 %v364_v25, %s2275_s7  ;;  %345 = vrot.lane.b32.xlu0 %v337_v26, %s2276_s3  ;;  %v309_v27 = vpop.f32.mrb[3].mxu0  ;;  %v340_v36 = vrot.slane %v1852_v24, 1  ;;  %v367_v37 = vrot.slane %v1852_v24, 2 }
 0x1b3   :  { %v338_v28 = vrot.slane %v309_v27, 1  ;;  %v365_v29 = vrot.slane %v309_v27, 2 }
 0x1b5   :  { %v1855_v30 = vpop.f32.mrb[4].mxu0  ;;  %v366_v31 = vsel %vm361_vm3, %v363_v19, %v365_v29  ;;  %v339_v32 = vsel %vm334_vm4, %v336_v18, %v338_v28 }
 0x1b6   :  { %v343_v33 = vrot.slane %v1855_v30, 1  ;;  %v370_v34 = vrot.slane %v1855_v30, 2  ;;  %374 = vrot.lane.b32.xlu1 %v366_v31, %s2275_s7  ;;  %347 = vrot.lane.b32.xlu0 %v339_v32, %s2276_s3  ;;  %v319_v35 = vpop.f32.mrb[5].mxu0  ;;  %v723_v31 = vld [vmem:[#allocation13] sm:$0xff]  ;;  %v724_v32 = vld [vmem:[#allocation13 + $0x8] sm:$0xff] }
 0x1b7   :  { %v341_v38 = vrot.slane %v319_v35, 1  ;;  %v368_v39 = vrot.slane %v319_v35, 2 }
 0x1b9   :  { %v369_v40 = vsel %vm361_vm3, %v367_v37, %v368_v39  ;;  %v342_v41 = vsel %vm334_vm4, %v340_v36, %v341_v38  ;;  %v371_v42 = vsel %vm361_vm3, %v368_v39, %v370_v34  ;;  %v344_v43 = vsel %vm334_vm4, %v341_v38, %v343_v33  ;;  %v1873_v16 = vpop.f32.mrb[6].mxu0 }
 0x1ba   :  { %376 = vrot.lane.b32.xlu1 %v369_v40, %s2275_s7  ;;  %349 = vrot.lane.b32.xlu0 %v342_v41, %s2276_s3  ;;  %v685_v17 = vpop.f32.mrb[7].mxu0  ;;  %v1958_v34 = vpack.c.bf16 %v724_v32, %v723_v31 }
 0x1bc   :  { %1959 = vmatprep.subr.bf16.mxu1 %v1958_v34 }
 0x1bd   :  { %v2610_v28 = vpop.f32.mrb[8].mxu0 }
 0x1be   :  { %378 = vrot.lane.b32.xlu1 %v371_v42, %s2275_s7  ;;  %351 = vrot.lane.b32.xlu0 %v344_v43, %s2276_s3  ;;  %v695_v33 = vpop.f32.mrb[9].mxu0 }
 0x224   :  { %v373_v45 = vpop.permute.xlu1 %372  ;;  %v346_v46 = vpop.permute.xlu0 %345 }
 0x225   :  { %v357_v47 = vadd.f32 %v346_v46, %v299_v20 }
 0x227   :  { %v384_v49 = vadd.f32 %v373_v45, %v357_v47 }
 0x228   :  { %v375_v50 = vpop.permute.xlu1 %374  ;;  %v348_v51 = vpop.permute.xlu0 %347 }
 0x229   :  { %v358_v52 = vadd.f32 %v1849_v15, %v348_v51  ;;  %v394_v53 = vadd.f32 %v1735_v48, %v384_v49 }
 0x22b   :  { %v385_v54 = vadd.f32 %v375_v50, %v358_v52  ;;  %v398_v55 = vmax.f32 %v394_v53, 0.0  ;;  %v1742_v52 = vld [vmem:[#allocation8] ss:$0 sm:$0xff] }
 0x22c   :  { %v377_v56 = vpop.permute.xlu1 %376  ;;  %v350_v57 = vpop.permute.xlu0 %349 }
 0x22d   :  { %v395_v58 = vadd.f32 %v1735_v48, %v385_v54  ;;  %v359_v59 = vadd.f32 %v1852_v24, %v350_v57  ;;  %v409_v60 = vrot.slane %v398_v55, 6  ;;  %v1748_v54 = vld [vmem:[#allocation11] ss:$0 sm:$0xff] }
 0x22f   :  { %v399_v61 = vmax.f32 %v395_v58, 0.0  ;;  %v386_v62 = vadd.f32 %v377_v56, %v359_v59  ;;  %v419_v63 = vsel %vm197_vm1, 0.0, %v409_v60  ;;  %v711_v58 = vadd.f32 %v1748_v54, %v685_v17 }
 0x230   :  { %1860 = vmatprep.mubr.msk.f32.mxu1 %vm423_vm5, %v419_v63  ;;  %v352_v0 = vpop.permute.xlu0 %351  ;;  %v379_v4 = vpop.permute.xlu1 %378 }
 0x231   :  { %v410_v1 = vrot.slane %v399_v61, 6  ;;  %v396_v2 = vadd.f32 %v1735_v48, %v386_v62  ;;  %v360_v3 = vadd.f32 %v352_v0, %v319_v35 }
 0x233   :  { %v400_v5 = vmax.f32 %v396_v2, 0.0  ;;  %v387_v6 = vadd.f32 %v379_v4, %v360_v3  ;;  %v411_v7 = vsel %vm197_vm1, %v409_v60, %v410_v1  ;;  %v421_v8 = vsel %vm197_vm1, %v410_v1, 0.0 }
 0x234   :  { %1861 = vmatmul.mubr.msk.f32.vlgmr.msra.gmra.mrb[0].mxu1 %vm423_vm5, %v411_v7  ;;  %v712_v3 = vadd.f32 %v1873_v16, %v1748_v54 }
 0x235   :  { %v397_v9 = vadd.f32 %v1735_v48, %v387_v6  ;;  %1863 = vmatprep.mubr.msk.f32.mxu1 %vm423_vm5, %v421_v8  ;;  %v412_v10 = vrot.slane %v400_v5, 6  ;;  %1961 = vmatpush3.bf16.msra.mxu1 %v1958_v34 }
 0x237   :  { %v401_v11 = vmax.f32 %v397_v9, 0.0  ;;  %v420_v12 = vsel %vm197_vm1, 0.0, %v412_v10 }
 0x238   :  { %1864 = vmatmul.mubr.msk.f32.gmra.mrb[2].mxu1 %vm423_vm5, %v420_v12  ;;  %v713_v12 = vadd.f32 %v1748_v54, %v695_v33 }
 0x239   :  { %v413_v13 = vrot.slane %v401_v11, 6 }
 0x23b   :  { %v414_v14 = vsel %vm197_vm1, %v412_v10, %v413_v13  ;;  %v422_v15 = vsel %vm197_vm1, %v413_v13, 0.0 }
 0x23c   :  { %1866 = vmatprep.mubr.msk.f32.mxu1 %vm423_vm5, %v414_v14 }
 0x23d   :  { %1867 = vmatmul.mubr.msk.f32.gmra.mrb[4].mxu1 %vm423_vm5, %v422_v15 }
 0x307   :  { %v1862_v18 = vpop.f32.mrb[0].mxu1 }
 0x308   :  { %v542_v19 = vrot.slane %v1862_v18, 1  ;;  %v568_v20 = vrot.slane %v1862_v18, 2  ;;  %v506_v21 = vpop.f32.mrb[1].mxu1 }
 0x309   :  { %v541_v22 = vrot.slane %v506_v21, 1  ;;  %v567_v23 = vrot.slane %v506_v21, 2 }
 0x30b   :  { %v1865_v24 = vpop.f32.mrb[2].mxu1  ;;  %v543_v25 = vsel %vm334_vm4, %v541_v22, %v542_v19  ;;  %v569_v26 = vsel %vm361_vm3, %v567_v23, %v568_v20 }
 0x30c   :  { %551 = vrot.lane.b32.xlu0 %v543_v25, %s2276_s3  ;;  %v516_v27 = vpop.f32.mrb[3].mxu1  ;;  %v546_v41 = vrot.slane %v1865_v24, 1  ;;  %v572_v42 = vrot.slane %v1865_v24, 2 }
 0x30d   :  { %v544_v29 = vrot.slane %v516_v27, 1  ;;  %v570_v30 = vrot.slane %v516_v27, 2 }
 0x30f   :  { %v545_v35 = vsel %vm334_vm4, %v542_v19, %v544_v29  ;;  %v571_v36 = vsel %vm361_vm3, %v568_v20, %v570_v30 }
 0x310   :  { %577 = vrot.lane.b32.xlu0 %v569_v26, %s2275_s7  ;;  %553 = vrot.lane.b32.xlu1 %v545_v35, %s2276_s3  ;;  %v1868_v37 = vpop.f32.mrb[4].mxu1 }
 0x311   :  { %v549_v38 = vrot.slane %v1868_v37, 1  ;;  %v575_v39 = vrot.slane %v1868_v37, 2  ;;  %v526_v40 = vpop.f32.mrb[5].mxu1 }
 0x312   :  { %v547_v43 = vrot.slane %v526_v40, 1  ;;  %v573_v44 = vrot.slane %v526_v40, 2 }
 0x314   :  { %579 = vrot.lane.b32.xlu1 %v571_v36, %s2275_s7  ;;  %v548_v45 = vsel %vm334_vm4, %v546_v41, %v547_v43  ;;  %v574_v46 = vsel %vm361_vm3, %v572_v42, %v573_v44  ;;  %v550_v47 = vsel %vm334_vm4, %v547_v43, %v549_v38  ;;  %v576_v48 = vsel %vm361_vm3, %v573_v44, %v575_v39  ;;  %v928_v39 = vld [vmem:[#allocation16] sm:$0xff] }
 0x315   :  { %555 = vrot.lane.b32.xlu0 %v548_v45, %s2276_s3 }
 0x318   :  { %581 = vrot.lane.b32.xlu1 %v574_v46, %s2275_s7 }
 0x319   :  { %557 = vrot.lane.b32.xlu0 %v550_v47, %s2276_s3 }
 0x31c   :  { %583 = vrot.lane.b32.xlu1 %v576_v48, %s2275_s7 }
 0x37e   :  { %v552_v49 = vpop.permute.xlu0 %551 }
 0x37f   :  { %v563_v50 = vadd.f32 %v552_v49, %v506_v21  ;;  %v714_v21 = vadd.f32 %v2610_v28, %v1748_v54 }
 0x382   :  { %v554_v51 = vpop.permute.xlu1 %553  ;;  %v578_v53 = vpop.permute.xlu0 %577 }
 0x383   :  { %v589_v55 = vadd.f32 %v578_v53, %v563_v50  ;;  %v564_v56 = vadd.f32 %v1862_v18, %v554_v51 }
 0x385   :  { %v599_v57 = vadd.f32 %v1742_v52, %v589_v55 }
 0x386   :  { %v580_v59 = vpop.permute.xlu1 %579 }
 0x387   :  { %v603_v60 = vmax.f32 %v599_v57, 0.0  ;;  %v590_v61 = vadd.f32 %v580_v59, %v564_v56  ;;  %v556_v62 = vpop.permute.xlu0 %555 }
 0x388   :  { %v565_v63 = vadd.f32 %v1865_v24, %v556_v62 }
 0x389   :  { %v2625_v0 = vadd.f32 %v711_v58, %v603_v60  ;;  %v600_v1 = vadd.f32 %v1742_v52, %v590_v61 }
 0x38a   :  { %v582_v2 = vpop.permute.xlu1 %581 }
 0x38b   :  { %v719_v4 = vmax.f32 %v2625_v0, 0.0  ;;  %v604_v5 = vmax.f32 %v600_v1, 0.0  ;;  %v591_v6 = vadd.f32 %v582_v2, %v565_v63  ;;  %v558_v7 = vpop.permute.xlu0 %557  ;;  %v1755_v2 = vld [vmem:[#allocation14] ss:$0 sm:$0xff] }
 0x38c   :  { %v566_v8 = vadd.f32 %v558_v7, %v526_v40  ;;  %v929_v40 = vld [vmem:[#allocation16 + $0x8] sm:$0xff] }
 0x38d   :  { %v731_v9 = vrot.slane %v719_v4, 4  ;;  %v2630_v10 = vadd.f32 %v712_v3, %v604_v5  ;;  %v601_v11 = vadd.f32 %v1742_v52, %v591_v6  ;;  %v1962_v41 = vpack.c.bf16 %v929_v40, %v928_v39 }
 0x38e   :  { %v584_v13 = vpop.permute.xlu1 %583 }
 0x38f   :  { %v720_v14 = vmax.f32 %v2630_v10, 0.0  ;;  %v605_v15 = vmax.f32 %v601_v11, 0.0  ;;  %v592_v17 = vadd.f32 %v584_v13, %v566_v8  ;;  %v741_v16 = vsel %vm730_vm6, 0.0, %v731_v9  ;;  %1963 = vmatprep.subr.bf16.mxu0 %v1962_v41 }
 0x390   :  { %1881 = vmatprep.mubr.msk.f32.mxu1 %vm423_vm5, %v741_v16  ;;  %1965 = vmatpush3.bf16.msra.mxu0 %v1962_v41  ;;  %v1140_v41 = vld [vmem:[#allocation17] sm:$0xff] }
 0x391   :  { %v732_v18 = vrot.slane %v720_v14, 4  ;;  %v2637_v19 = vadd.f32 %v713_v12, %v605_v15  ;;  %v602_v20 = vadd.f32 %v1742_v52, %v592_v17 }
 0x393   :  { %v721_v22 = vmax.f32 %v2637_v19, 0.0  ;;  %v606_v23 = vmax.f32 %v602_v20, 0.0  ;;  %v733_v24 = vsel %vm730_vm6, %v731_v9, %v732_v18  ;;  %v743_v25 = vsel %vm730_vm6, %v732_v18, 0.0  ;;  %v1316_v19 = vld [vmem:[%s2838_s13 + $0x8] sm:$0xff] }
 0x394   :  { %1882 = vmatmul.mubr.msk.f32.vlgmr.msra.gmra.mrb[6].mxu1 %vm423_vm5, %v733_v24 }
 0x395   :  { %v734_v26 = vrot.slane %v721_v22, 4  ;;  %v2646_v27 = vadd.f32 %v714_v21, %v606_v23  ;;  %1884 = vmatprep.mubr.msk.f32.mxu1 %vm423_vm5, %v743_v25 }
 0x397   :  { %v722_v29 = vmax.f32 %v2646_v27, 0.0  ;;  %v742_v28 = vsel %vm730_vm6, 0.0, %v734_v26  ;;  %v1315_v27 = vld [vmem:[%s2838_s13] sm:$0xff] }
 0x398   :  { %1885 = vmatmul.mubr.msk.f32.gmra.mrb[8].mxu1 %vm423_vm5, %v742_v28 }
 0x399   :  { %v735_v30 = vrot.slane %v722_v29, 4 }
 0x39b   :  { %v736_v31 = vsel %vm730_vm6, %v734_v26, %v735_v30  ;;  %v744_v32 = vsel %vm730_vm6, %v735_v30, 0.0 }
 0x39c   :  { %1887 = vmatprep.mubr.msk.f32.mxu1 %vm423_vm5, %v736_v31 }
 0x39d   :  { %1888 = vmatmul.mubr.msk.f32.gmra.mrb[10].mxu1 %vm423_vm5, %v744_v32 }
 0x467   :  { %v1883_v33 = vpop.f32.mrb[6].mxu1 }
 0x468   :  { %v863_v34 = vrot.slane %v1883_v33, 2  ;;  %v889_v35 = vrot.slane %v1883_v33, 4  ;;  %v827_v36 = vpop.f32.mrb[7].mxu1 }
 0x469   :  { %v862_v37 = vrot.slane %v827_v36, 2  ;;  %v888_v38 = vrot.slane %v827_v36, 4 }
 0x46b   :  { %v1886_v42 = vpop.f32.mrb[8].mxu1  ;;  %v864_v43 = vsel %vm361_vm3, %v862_v37, %v863_v34  ;;  %v890_v44 = vsel %vm730_vm6, %v888_v38, %v889_v35 }
 0x46c   :  { %872 = vrot.lane.b32.xlu0 %v864_v43, %s2276_s3  ;;  %v837_v45 = vpop.f32.mrb[9].mxu1  ;;  %v867_v54 = vrot.slane %v1886_v42, 2  ;;  %v893_v55 = vrot.slane %v1886_v42, 4 }
 0x46d   :  { %v865_v46 = vrot.slane %v837_v45, 2  ;;  %v891_v47 = vrot.slane %v837_v45, 4 }
 0x46f   :  { %v866_v48 = vsel %vm361_vm3, %v863_v34, %v865_v46  ;;  %v892_v49 = vsel %vm730_vm6, %v889_v35, %v891_v47 }
 0x470   :  { %898 = vrot.lane.b32.xlu0 %v890_v44, %s2275_s7  ;;  %874 = vrot.lane.b32.xlu1 %v866_v48, %s2276_s3  ;;  %v1889_v50 = vpop.f32.mrb[10].mxu1 }
 0x471   :  { %v870_v51 = vrot.slane %v1889_v50, 2  ;;  %v896_v52 = vrot.slane %v1889_v50, 4  ;;  %v847_v53 = vpop.f32.mrb[11].mxu1  ;;  %v2277_v50 = vmov 0.0  }
 0x472   :  { %v868_v56 = vrot.slane %v847_v53, 2  ;;  %v894_v57 = vrot.slane %v847_v53, 4  ;;  %1907 = vmatprep.mubr.f32.mxu1 %v2277_v50 }
 0x474   :  { %900 = vrot.lane.b32.xlu1 %v892_v49, %s2275_s7  ;;  %v869_v58 = vsel %vm361_vm3, %v867_v54, %v868_v56  ;;  %v895_v59 = vsel %vm730_vm6, %v893_v55, %v894_v57  ;;  %v871_v60 = vsel %vm361_vm3, %v868_v56, %v870_v51  ;;  %v897_v61 = vsel %vm730_vm6, %v894_v57, %v896_v52 }
 0x475   :  { %876 = vrot.lane.b32.xlu0 %v869_v58, %s2276_s3 }
 0x478   :  { %902 = vrot.lane.b32.xlu1 %v895_v59, %s2275_s7 }
 0x479   :  { %878 = vrot.lane.b32.xlu0 %v871_v60, %s2276_s3 }
 0x47c   :  { %904 = vrot.lane.b32.xlu1 %v897_v61, %s2275_s7 }
 0x4de   :  { %v873_v62 = vpop.permute.xlu0 %872 }
 0x4df   :  { %v884_v63 = vadd.f32 %v873_v62, %v827_v36 }
 0x4e2   :  { %v875_v1 = vpop.permute.xlu1 %874  ;;  %v899_v3 = vpop.permute.xlu0 %898 }
 0x4e3   :  { %v910_v5 = vadd.f32 %v899_v3, %v884_v63  ;;  %v885_v6 = vadd.f32 %v1883_v33, %v875_v1 }
 0x4e5   :  { %v920_v7 = vadd.f32 %v1755_v2, %v910_v5 }
 0x4e6   :  { %v901_v8 = vpop.permute.xlu1 %900 }
 0x4e7   :  { %v924_v9 = vmax.f32 %v920_v7, 0.0  ;;  %v911_v11 = vadd.f32 %v901_v8, %v885_v6  ;;  %v877_v12 = vpop.permute.xlu0 %876 }
 0x4e8   :  { %v886_v13 = vadd.f32 %v1886_v42, %v877_v12  ;;  %v1141_v42 = vld [vmem:[#allocation17 + $0x8] sm:$0xff] }
 0x4e9   :  { %v935_v15 = vrot.slane %v924_v9, 4  ;;  %v921_v17 = vadd.f32 %v1755_v2, %v911_v11  ;;  %v1966_v43 = vpack.c.bf16 %v1141_v42, %v1140_v41  ;;  %v1492_v9 = vld [vmem:[%s2840_s15] sm:$0xff]  ;;  %v1493_v11 = vld [vmem:[%s2840_s15 + $0x8] sm:$0xff] }
 0x4ea   :  { %v903_v16 = vpop.permute.xlu1 %902  ;;  %v1978_v12 = vpack.c.bf16 %v1493_v11, %v1492_v9 }
 0x4eb   :  { %v925_v18 = vmax.f32 %v921_v17, 0.0  ;;  %v912_v20 = vadd.f32 %v903_v16, %v886_v13  ;;  %v879_v21 = vpop.permute.xlu0 %878  ;;  %v945_v23 = vsel %vm730_vm6, 0.0, %v935_v15  ;;  %1967 = vmatprep.subr.bf16.mxu1 %v1966_v43  ;;  %v1762_v16 = vld [vmem:[%s2835_s10] ss:$0 sm:$0xff] }
 0x4ec   :  { %v887_v24 = vadd.f32 %v879_v21, %v847_v53  ;;  %1894 = vmatprep.mubr.msk.f32.mxu0 %vm423_vm5, %v945_v23  ;;  %1969 = vmatpush3.bf16.msra.mxu1 %v1966_v43 }
 0x4ed   :  { %v936_v25 = vrot.slane %v925_v18, 4  ;;  %v922_v26 = vadd.f32 %v1755_v2, %v912_v20  ;;  %1979 = vmatprep.subr.bf16.mxu1 %v1978_v12 }
 0x4ee   :  { %v905_v28 = vpop.permute.xlu1 %904 }
 0x4ef   :  { %v937_v30 = vsel %vm730_vm6, %v935_v15, %v936_v25  ;;  %v926_v31 = vmax.f32 %v922_v26, 0.0  ;;  %v913_v32 = vadd.f32 %v905_v28, %v887_v24  ;;  %v947_v33 = vsel %vm730_vm6, %v936_v25, 0.0 }
 0x4f0   :  { %1895 = vmatmul.mubr.msk.f32.vlgmr.msra.gmra.mrb[10].mxu0 %vm423_vm5, %v937_v30 }
 0x4f1   :  { %v938_v34 = vrot.slane %v926_v31, 4  ;;  %v923_v35 = vadd.f32 %v1755_v2, %v913_v32  ;;  %1897 = vmatprep.mubr.msk.f32.mxu0 %vm423_vm5, %v947_v33 }
 0x4f3   :  { %v927_v36 = vmax.f32 %v923_v35, 0.0  ;;  %v946_v37 = vsel %vm730_vm6, 0.0, %v938_v34 }
 0x4f4   :  { %1898 = vmatmul.mubr.msk.f32.gmra.mrb[12].mxu0 %vm423_vm5, %v946_v37 }
 0x4f5   :  { %v939_v38 = vrot.slane %v927_v36, 4 }
 0x4f7   :  { %v940_v39 = vsel %vm730_vm6, %v938_v34, %v939_v38  ;;  %v948_v40 = vsel %vm730_vm6, %v939_v38, 0.0 }
 0x4f8   :  { %1900 = vmatprep.mubr.msk.f32.mxu0 %vm423_vm5, %v940_v39 }
 0x4f9   :  { %1901 = vmatmul.mubr.msk.f32.gmra.mrb[14].mxu0 %vm423_vm5, %v948_v40 }
 0x4fa   :  { %1924 = vmatprep.mubr.f32.mxu0 %v2277_v50 }
 0x5c3   :  { %v1896_v44 = vpop.f32.mrb[10].mxu0 }
 0x5c4   :  { %v1067_v45 = vrot.slane %v1896_v44, 2  ;;  %v1093_v46 = vrot.slane %v1896_v44, 4  ;;  %v1031_v47 = vpop.f32.mrb[11].mxu0 }
 0x5c5   :  { %v1066_v48 = vrot.slane %v1031_v47, 2  ;;  %v1092_v49 = vrot.slane %v1031_v47, 4 }
 0x5c7   :  { %v1899_v51 = vpop.f32.mrb[12].mxu0  ;;  %v1094_v52 = vsel %vm730_vm6, %v1092_v49, %v1093_v46  ;;  %v1068_v53 = vsel %vm361_vm3, %v1066_v48, %v1067_v45 }
 0x5c8   :  { %1102 = vrot.lane.b32.xlu1 %v1094_v52, %s2275_s7  ;;  %1076 = vrot.lane.b32.xlu0 %v1068_v53, %s2276_s3  ;;  %v1041_v54 = vpop.f32.mrb[13].mxu0  ;;  %v1071_v63 = vrot.slane %v1899_v51, 2  ;;  %v1097_v1 = vrot.slane %v1899_v51, 4 }
 0x5c9   :  { %v1069_v55 = vrot.slane %v1041_v54, 2  ;;  %v1095_v56 = vrot.slane %v1041_v54, 4 }
 0x5cb   :  { %v1096_v57 = vsel %vm730_vm6, %v1093_v46, %v1095_v56  ;;  %v1070_v58 = vsel %vm361_vm3, %v1067_v45, %v1069_v55 }
 0x5cc   :  { %1104 = vrot.lane.b32.xlu1 %v1096_v57, %s2275_s7  ;;  %1078 = vrot.lane.b32.xlu0 %v1070_v58, %s2276_s3  ;;  %v1902_v59 = vpop.f32.mrb[14].mxu0 }
 0x5cd   :  { %v1074_v60 = vrot.slane %v1902_v59, 2  ;;  %v1100_v61 = vrot.slane %v1902_v59, 4  ;;  %v1051_v62 = vpop.f32.mrb[15].mxu0 }
 0x5ce   :  { %v1072_v2 = vrot.slane %v1051_v62, 2  ;;  %v1098_v3 = vrot.slane %v1051_v62, 4 }
 0x5d0   :  { %v1075_v5 = vsel %vm361_vm3, %v1072_v2, %v1074_v60  ;;  %v1073_v6 = vsel %vm361_vm3, %v1071_v63, %v1072_v2  ;;  %v1101_v7 = vsel %vm730_vm6, %v1098_v3, %v1100_v61  ;;  %v1099_v8 = vsel %vm730_vm6, %v1097_v1, %v1098_v3 }
 0x5d1   :  { %1082 = vrot.lane.b32.xlu1 %v1075_v5, %s2276_s3  ;;  %1080 = vrot.lane.b32.xlu0 %v1073_v6, %s2276_s3 }
 0x5d5   :  { %1108 = vrot.lane.b32.xlu1 %v1101_v7, %s2275_s7  ;;  %1106 = vrot.lane.b32.xlu0 %v1099_v8, %s2275_s7 }
 0x63a   :  { %v1103_v13 = vpop.permute.xlu1 %1102  ;;  %v1077_v15 = vpop.permute.xlu0 %1076 }
 0x63b   :  { %v1088_v17 = vadd.f32 %v1077_v15, %v1031_v47  ;;  %v1318_v47 = vld [vmem:[%s2838_s13 + $0x18] sm:$0xff] }
 0x63d   :  { %v1114_v18 = vadd.f32 %v1103_v13, %v1088_v17 }
 0x63e   :  { %v1105_v20 = vpop.permute.xlu1 %1104  ;;  %v1079_v21 = vpop.permute.xlu0 %1078 }
 0x63f   :  { %v1124_v23 = vadd.f32 %v1762_v16, %v1114_v18  ;;  %v1089_v24 = vadd.f32 %v1896_v44, %v1079_v21 }
 0x641   :  { %v1128_v25 = vmax.f32 %v1124_v23, 0.0  ;;  %v1115_v26 = vadd.f32 %v1105_v20, %v1089_v24 }
 0x643   :  { %v1132_v28 = vadd.f32 %v1128_v25, %v719_v4  ;;  %v1125_v30 = vadd.f32 %v1762_v16, %v1115_v26  ;;  %v1083_v31 = vpop.permute.xlu1 %1082  ;;  %v1081_v32 = vpop.permute.xlu0 %1080 }
 0x644   :  { %v1091_v35 = vadd.f32 %v1083_v31, %v1051_v62  ;;  %v1090_v36 = vadd.f32 %v1899_v51, %v1081_v32 }
 0x645   :  { %v1136_v33 = vmax.f32 %v1132_v28, 0.0  ;;  %v1129_v34 = vmax.f32 %v1125_v30, 0.0 }
 0x647   :  { %v1133_v37 = vadd.f32 %v1129_v34, %v720_v14  ;;  %v1109_v38 = vpop.permute.xlu1 %1108  ;;  %1908 = vmatmul.mubr.msk.f32.vlgmr.msra.gmra.mrb[12].mxu1 %vm423_vm5, %v1136_v33  ;;  %v1107_v39 = vpop.permute.xlu0 %1106 }
 0x648   :  { %v1117_v40 = vadd.f32 %v1109_v38, %v1091_v35  ;;  %v1116_v41 = vadd.f32 %v1107_v39, %v1090_v36  ;;  %1981 = vmatpush3.bf16.msra.mxu1 %v1978_v12  ;;  %v1767_v12 = vld [vmem:[%s2837_s12] ss:$0 sm:$0xff] }
 0x649   :  { %v1137_v42 = vmax.f32 %v1133_v37, 0.0 }
 0x64a   :  { %v1127_v0 = vadd.f32 %v1762_v16, %v1117_v40  ;;  %v1126_v4 = vadd.f32 %v1762_v16, %v1116_v41 }
 0x64b   :  { %1910 = vmatprep.mubr.msk.f32.mxu1 %vm423_vm5, %v1137_v42 }
 0x64c   :  { %v1131_v43 = vmax.f32 %v1127_v0, 0.0  ;;  %v1130_v44 = vmax.f32 %v1126_v4, 0.0  ;;  %1911 = vmatmul.mubr.f32.gmra.mrb[14].mxu1 %v2277_v50 }
 0x64e   :  { %v1135_v10 = vadd.f32 %v1131_v43, %v722_v29  ;;  %v1134_v14 = vadd.f32 %v1130_v44, %v721_v22  ;;  %v1970_v22 = vpack.c.bf16 %v1316_v19, %v1315_v27  ;;  %v1317_v29 = vld [vmem:[%s2838_s13 + $0x10] sm:$0xff] }
 0x64f   :  { %v1974_v48 = vpack.c.bf16 %v1318_v47, %v1317_v29  ;;  %v1619_v47 = vld [vmem:[%s2842_s17] sm:$0xff] }
 0x650   :  { %v1139_v45 = vmax.f32 %v1135_v10, 0.0  ;;  %v1138_v46 = vmax.f32 %v1134_v14, 0.0  ;;  %1971 = vmatprep.subr.bf16.mxu0 %v1970_v22 }
 0x651   :  { %1973 = vmatpush3.bf16.msra.mxu0 %v1970_v22 }
 0x652   :  { %1913 = vmatprep.mubr.msk.f32.mxu1 %vm423_vm5, %v1138_v46  ;;  %1975 = vmatprep.subr.bf16.mxu0 %v1974_v48 }
 0x653   :  { %1914 = vmatmul.mubr.msk.f32.gmra.mrb[16].mxu1 %vm423_vm5, %v1139_v45 }
 0x654   :  { %1937 = vmatprep.mubr.msk.f32.mxu1 %vm423_vm5, %v1136_v33 }
 0x655   :  { %1977 = vmatpush3.bf16.msra.mxu0 %v1974_v48  ;;  %v1620_v48 = vld [vmem:[%s2842_s17 + $0x8] sm:$0xff] }
 0x657   :  { %1938 = vmatmul.mubr.msk.f32.vlgmr.msra.gmra.mrb[18].mxu1 %vm423_vm5, %v1137_v42 }
 0x658   :  { %1940 = vmatprep.mubr.msk.f32.mxu1 %vm423_vm5, %v1138_v46 }
 0x65b   :  { %1941 = vmatmul.mubr.msk.f32.gmra.mrb[20].mxu1 %vm423_vm5, %v1139_v45 }
 0x71a   :  { %v1909_v49 = vpop.f32.mrb[12].mxu1 }
 0x71b   :  { %v1260_v51 = vrot.slane %v1909_v49, 4  ;;  %1285 = vrot.lane.b32.xlu1 %v1909_v49, %s2278_s8  ;;  %v1224_v52 = vpop.f32.mrb[13].mxu1 }
 0x71c   :  { %v1259_v53 = vrot.slane %v1224_v52, 4 }
 0x71e   :  { %v1261_v54 = vsel %vm730_vm6, %v1259_v53, %v1260_v51  ;;  %v1622_v53 = vld [vmem:[%s2842_s17 + $0x18] sm:$0xff] }
 0x71f   :  { %1269 = vrot.lane.b32.xlu0 %v1261_v54, %s2275_s7  ;;  %v1912_v55 = vpop.f32.mrb[14].mxu1 }
 0x720   :  { %v1234_v56 = vpop.f32.mrb[15].mxu1  ;;  %v1264_v62 = vrot.slane %v1912_v55, 4 }
 0x721   :  { %v1262_v57 = vrot.slane %v1234_v56, 4  ;;  %1287 = vrot.lane.b32.xlu1 %v1234_v56, %s2278_s8 }
 0x723   :  { %v1263_v58 = vsel %vm730_vm6, %v1260_v51, %v1262_v57  ;;  %v2279_v51 = vmov 0.0|0.0  }
 0x724   :  { %1271 = vrot.lane.b32.xlu0 %v1263_v58, %s2275_s7  ;;  %1982 = vmatprep.subr.bf16.mxu0 %v2279_v51  ;;  %v1772_v58 = vld [vmem:[%s2839_s14] ss:$0 sm:$0xff] }
 0x726   :  { %v1915_v59 = vpop.f32.mrb[16].mxu1 }
 0x727   :  { %v1267_v60 = vrot.slane %v1915_v59, 4  ;;  %v1244_v61 = vpop.f32.mrb[17].mxu1 }
 0x728   :  { %v1265_v63 = vrot.slane %v1244_v61, 4 }
 0x72a   :  { %v2748_v1 = vpop.f32.mrb[18].mxu1  ;;  %v1268_v2 = vsel %vm730_vm6, %v1265_v63, %v1267_v60  ;;  %v1266_v3 = vsel %vm730_vm6, %v1264_v62, %v1265_v63 }
 0x72b   :  { %v2752_v5 = vpop.f32.mrb[19].mxu1  ;;  %1275 = vrot.lane.b32.xlu1 %v1268_v2, %s2275_s7  ;;  %1273 = vrot.lane.b32.xlu0 %v1266_v3, %s2275_s7 }
 0x72e   :  { %v2756_v6 = vpop.f32.mrb[20].mxu1 }
 0x72f   :  { %v2758_v7 = vpop.f32.mrb[21].mxu1  ;;  %1291 = vrot.lane.b32.xlu1 %v1915_v59, %s2278_s8  ;;  %1289 = vrot.lane.b32.xlu0 %v1244_v61, %s2278_s8 }
 0x78d   :  { %v1286_v11 = vpop.permute.xlu1 %1285 }
 0x791   :  { %v1270_v8 = vpop.permute.xlu0 %1269 }
 0x792   :  { %v1281_v9 = vadd.f32 %v1270_v8, %v1224_v52  ;;  %v1621_v52 = vld [vmem:[%s2842_s17 + $0x10] sm:$0xff]  ;;  %s2281_s17 = smov [#allocation19]  }
 0x793   :  { %v1288_v20 = vpop.permute.xlu1 %1287  ;;  %v1986_v54 = vpack.c.bf16 %v1622_v53, %v1621_v52  ;;  %s1714_s5 = sshll.u32 %s2281_s17, 4  ;;  %s1715_s5 = int_to_ptr.vmem [resolvable:$true] %s1714_s5 }
 0x794   :  { %v1297_v13 = vadd.f32 %v1286_v11, %v1281_v9  ;;  %s2227_s20 = scalar_lea.vmem %s1715_s5, 32  ;;  %p2232_p11 = scmp.lt.s32.totalorder %s1715_s5, %s1715_s5 }
 0x795   :  { %p2228_p10 = scmp.ne.s32.totalorder %s1715_s5, %s2227_s20  ;;  %p2233_p12 = scmp.lt.s32.totalorder %s2227_s20, %s2227_s20 }
 0x796   :  { %v1307_v15 = vadd.f32 %v1767_v12, %v1297_v13  ;;  %v1272_v17 = vpop.permute.xlu0 %1271 }
 0x797   :  { %v1282_v16 = vadd.f32 %v1909_v49, %v1272_v17  ;;  %v1983_v49 = vpack.c.bf16 %v1620_v48, %v1619_v47  ;;  %p2234_p13 = por %p2233_p12, %p2232_p11 }
 0x798   :  { %v1311_v18 = vmax.f32 %v1307_v15, 0.0 }
 0x799   :  { %v1298_v21 = vadd.f32 %v1288_v20, %v1282_v16  ;;  %p2235_p0 = pnand %p2234_p13, %p2228_p10 }
 0x79a   :  { %1925 = vmatmul.mubr.msk.f32.vlgmr.msra.gmra.mrb[16].mxu0 %vm1320_vm7, %v1311_v18 }
 0x79b   :  { %v1308_v23 = vadd.f32 %v1767_v12, %v1298_v21  ;;  %1984 = vmatpush3.bf16.msra.mxu0 %v1983_v49  ;;  %v1778_v49 = vld [vmem:[%s2843_s18] ss:$0 sm:$0xff] }
 0x79c   :  { %1985 = vmatprep.subr.bf16.mxu0 %v2279_v51 }
 0x79d   :  { %v1312_v24 = vmax.f32 %v1308_v23, 0.0  ;;  %v1276_v25 = vpop.permute.xlu1 %1275  ;;  %v1274_v26 = vpop.permute.xlu0 %1273 }
 0x79e   :  { %v1284_v28 = vadd.f32 %v1276_v25, %v1244_v61  ;;  %v1283_v30 = vadd.f32 %v1912_v55, %v1274_v26  ;;  %v1777_v61 = vld [vmem:[%s2841_s16] ss:$0 sm:$0xff] }
 0x79f   :  { %1927 = vmatprep.mubr.msk.f32.mxu0 %vm1320_vm7, %v1312_v24  ;;  %1987 = vmatpush3.bf16.msra.mxu0 %v1986_v54  ;;  %v1586_v63 = vadd.f32 %v1777_v61, %v2752_v5 }
 0x7a0   :  { %1928 = vmatmul.mubr.f32.gmra.mrb[18].mxu0 %v2277_v50 }
 0x7a1   :  { %v1292_v31 = vpop.permute.xlu1 %1291  ;;  %v1290_v32 = vpop.permute.xlu0 %1289 }
 0x7a2   :  { %v1300_v33 = vadd.f32 %v1292_v31, %v1284_v28  ;;  %v1299_v34 = vadd.f32 %v1290_v32, %v1283_v30 }
 0x7a4   :  { %v1310_v35 = vadd.f32 %v1767_v12, %v1300_v33  ;;  %v1309_v36 = vadd.f32 %v1767_v12, %v1299_v34  ;;  %v1587_v12 = vadd.f32 %v2748_v1, %v1777_v61  ;;  %v1589_v34 = vadd.f32 %v2756_v6, %v1777_v61 }
 0x7a6   :  { %v1314_v37 = vmax.f32 %v1310_v35, 0.0  ;;  %v1313_v38 = vmax.f32 %v1309_v36, 0.0  ;;  %v1588_v35 = vadd.f32 %v1777_v61, %v2758_v7 }
 0x7a8   :  { %1930 = vmatprep.mubr.msk.f32.mxu0 %vm1320_vm7, %v1313_v38 }
 0x7a9   :  { %1931 = vmatmul.mubr.msk.f32.gmra.mrb[20].mxu0 %vm1320_vm7, %v1314_v37 }
 0x7aa   :  { %1951 = vmatprep.mubr.msk.f32.mxu0 %vm2280_vm8, %v2277_v50 }
 0x86d   :  { %v1926_v39 = vpop.f32.mrb[16].mxu0 }
 0x86e   :  { %v1437_v40 = vrot.slane %v1926_v39, 4  ;;  %1462 = vrot.lane.b32.xlu0 %v1926_v39, %s2278_s8  ;;  %v1401_v41 = vpop.f32.mrb[17].mxu0 }
 0x86f   :  { %v1436_v42 = vrot.slane %v1401_v41, 4 }
 0x871   :  { %v1438_v0 = vsel %vm730_vm6, %v1436_v42, %v1437_v40 }
 0x872   :  { %1446 = vrot.lane.b32.xlu0 %v1438_v0, %s2275_s7 }
 0x873   :  { %v1929_v4 = vpop.f32.mrb[18].mxu0 }
 0x874   :  { %v1411_v43 = vpop.f32.mrb[19].mxu0  ;;  %v1441_v27 = vrot.slane %v1929_v4, 4 }
 0x875   :  { %v1439_v44 = vrot.slane %v1411_v43, 4  ;;  %1464 = vrot.lane.b32.xlu1 %v1411_v43, %s2278_s8 }
 0x877   :  { %v1440_v10 = vsel %vm730_vm6, %v1437_v40, %v1439_v44 }
 0x879   :  { %1448 = vrot.lane.b32.xlu1 %v1440_v10, %s2275_s7 }
 0x87c   :  { %v1932_v14 = vpop.f32.mrb[20].mxu0 }
 0x87d   :  { %v1444_v45 = vrot.slane %v1932_v14, 4  ;;  %v1421_v46 = vpop.f32.mrb[21].mxu0 }
 0x87e   :  { %v1442_v19 = vrot.slane %v1421_v46, 4 }
 0x880   :  { %v1445_v22 = vsel %vm730_vm6, %v1442_v19, %v1444_v45  ;;  %v1443_v29 = vsel %vm730_vm6, %v1441_v27, %v1442_v19 }
 0x881   :  { %1452 = vrot.lane.b32.xlu1 %v1445_v22, %s2275_s7  ;;  %1450 = vrot.lane.b32.xlu0 %v1443_v29, %s2275_s7 }
 0x885   :  { %1468 = vrot.lane.b32.xlu1 %v1932_v14, %s2278_s8  ;;  %1466 = vrot.lane.b32.xlu0 %v1421_v46, %s2278_s8 }
 0x8e0   :  { %v1463_v55 = vpop.permute.xlu0 %1462 }
 0x8e4   :  { %v1447_v56 = vpop.permute.xlu0 %1446 }
 0x8e5   :  { %v1458_v57 = vadd.f32 %v1447_v56, %v1401_v41 }
 0x8e7   :  { %v1474_v59 = vadd.f32 %v1463_v55, %v1458_v57  ;;  %v1465_v60 = vpop.permute.xlu1 %1464 }
 0x8e9   :  { %v1484_v62 = vadd.f32 %v1772_v58, %v1474_v59 }
 0x8eb   :  { %v1488_v2 = vmax.f32 %v1484_v62, 0.0  ;;  %v1449_v3 = vpop.permute.xlu1 %1448 }
 0x8ec   :  { %v1459_v50 = vadd.f32 %v1926_v39, %v1449_v3 }
 0x8ed   :  { %v1590_v8 = vadd.f32 %v1586_v63, %v1488_v2 }
 0x8ee   :  { %v1475_v9 = vadd.f32 %v1465_v60, %v1459_v50 }
 0x8ef   :  { %v1594_v16 = vmax.f32 %v1590_v8, 0.0 }
 0x8f0   :  { %v1485_v11 = vadd.f32 %v1772_v58, %v1475_v9 }
 0x8f1   :  { %v1598_v5 = vsel %vm1320_vm7, %v1594_v16, 0.0 }
 0x8f2   :  { %v1489_v13 = vmax.f32 %v1485_v11, 0.0 }
 0x8f3   :  { %v1453_v15 = vpop.permute.xlu1 %1452  ;;  %v1451_v17 = vpop.permute.xlu0 %1450 }
 0x8f4   :  { %v1591_v18 = vadd.f32 %v1587_v12, %v1489_v13  ;;  %v1461_v21 = vadd.f32 %v1453_v15, %v1421_v46  ;;  %v1460_v23 = vadd.f32 %v1929_v4, %v1451_v17 }
 0x8f6   :  { %v1595_v20 = vmax.f32 %v1591_v18, 0.0 }
 0x8f7   :  { %v1469_v24 = vpop.permute.xlu1 %1468  ;;  %v1467_v25 = vpop.permute.xlu0 %1466 }
 0x8f8   :  { %v1599_v26 = vsel %vm1320_vm7, %v1595_v20, 0.0  ;;  %v1477_v28 = vadd.f32 %v1469_v24, %v1461_v21  ;;  %v1476_v30 = vadd.f32 %v1467_v25, %v1460_v23 }
 0x8f9   :  { %v1600_v31 = vadd.f32 %v1599_v26, %v1598_v5 }
 0x8fa   :  { %v1487_v32 = vadd.f32 %v1772_v58, %v1477_v28  ;;  %v1486_v33 = vadd.f32 %v1772_v58, %v1476_v30 }
 0x8fb   :  { %v1601_v1 = vrot.slane %v1600_v31, 4 }
 0x8fc   :  { %v1491_v36 = vmax.f32 %v1487_v32, 0.0  ;;  %v1490_v37 = vmax.f32 %v1486_v33, 0.0 }
 0x8fd   :  { %v1602_v38 = vadd.f32 %v1601_v1, %v1600_v31 }
 0x8fe   :  { %v1593_v39 = vadd.f32 %v1589_v34, %v1491_v36  ;;  %v1592_v40 = vadd.f32 %v1588_v35, %v1490_v37 }
 0x8ff   :  { %v1603_v0 = vrot.slane %v1602_v38, 2 }
 0x900   :  { %v1597_v41 = vmax.f32 %v1593_v39, 0.0  ;;  %v1596_v42 = vmax.f32 %v1592_v40, 0.0 }
 0x901   :  { %v1604_v10 = vadd.f32 %v1603_v0, %v1602_v38 }
 0x902   :  { %v1608_v4 = vsel %vm1320_vm7, %v1597_v41, 0.0  ;;  %v1607_v43 = vsel %vm1320_vm7, %v1596_v42, 0.0 }
 0x903   :  { %v1609_v44 = vadd.f32 %v1608_v4, %v1607_v43  ;;  %v1605_v6 = vrot.slane %v1604_v10, 1 }
 0x905   :  { %v1610_v14 = vrot.slane %v1609_v44, 4  ;;  %v1606_v19 = vadd.f32 %v1605_v6, %v1604_v10 }
 0x907   :  { %v1611_v45 = vadd.f32 %v1610_v14, %v1609_v44  ;;  %v1617_v29 = vmul.f32 0.0625, %v1606_v19 }
 0x909   :  { %v1612_v46 = vrot.slane %v1611_v45, 2 }
 0x90b   :  { %v1613_v27 = vadd.f32 %v1612_v46, %v1611_v45 }
 0x90d   :  { %v1614_v7 = vrot.slane %v1613_v27, 1 }
 0x90f   :  { %v1615_v22 = vadd.f32 %v1614_v7, %v1613_v27 }
 0x911   :  { %v1618_v47 = vmul.f32 0.0625, %v1615_v22 }
 0x913   :  { %v1633_v48 = vsel %vm1632_vm9, %v1618_v47, %v1617_v29 }
 0x914   :  { %1952 = vmatmul.mubr.msk.f32.vlgmr.msra.gmra.mrb[22].mxu0 %vm1320_vm7, %v1633_v48 }
 0x9e7   :  { %v1702_v51 = vpop.f32.mrb[22].mxu0 }
 0x9e8   :  { %v1703_v52 = vadd.f32 %v1778_v49, %v1702_v51  ;;  %v1953_v53 = vpop.f32.mrb[23].mxu0 }
 0x9ea   :  { %1707 = vst.msk [vmem:[#allocation19] sm:$0x3] %vm1706_vm10, %v1703_v52 }
 0x9eb   :  { %2238 = shalt.err (!%p2235_p0)
}
 0x9ec   :  { %s2239_s15 = scalar_lea.hbm %s2844_s19, 32 }
 0x9ed   :  { %p2240_p1 = scmp.ne.s32.totalorder %s2844_s19, %s2239_s15  ;;  %p2243_p2 = scmp.lt.u32.totalorder %s2239_s15, %s2844_s19 }
 0x9ef   :  { %p2245_p3 = pnand %p2243_p2, %p2240_p1 }
 0x9f1   :  { %2248 = shalt.err (!%p2245_p3)
}
 0x9f2   :  { %1717 = dma.vmem_to_hbm [thread:$0]  %s1715_s5, 32, %s2844_s19, [#allocation4]  }
 0x9f3   :  { %2261 = dma.done.wait [#allocation4], 32  }
 0x9f4   :  { %2262 = vsyncadd [#allocation4], 4294967264 }
 0x9f5   :  { %1721 = vsyncpa [#allocation3], 1 }
 0x9f6   :  { %1722 = vsyncpa [#allocation6], 1 }
 0x9f7   :  { %1723 = vsyncpa [#allocation9], 1 }
 0x9f8   :  { %1724 = vsyncpa [#allocation12], 1 }
 0x9f9   :  { %1725 = vsyncpa [#allocation15], 1 }
 0x9fa   :  { %1726 = vsyncpa [#allocation18], 1 }
 0x9fb   :  { %1727 = vsyncpa [#allocation4], 1 }

</bundles_post_ra>
